<compile_context>
chip_gen: v5e
topology: v5e:2x2
jax: 0.10.0
libtpu: 0.0.40
codegen_flags: <defaults>
</compile_context>

<pallas_src>
import functools

import jax
import jax.numpy as jnp
from jax.experimental import pallas as pl
from jax.experimental.pallas import tpu as pltpu

H = 64          # LSTM hidden size (module spec)
HP = 128        # lane-padded hidden: each gate owns one full 128-lane block
LEAK = 0.01     # torch.nn.LeakyReLU default negative_slope
OBS_F = 3       # observation features per timestep
DEC_F = 2       # decision features


def _leaky_relu(x):
    return jnp.where(x > 0, x, LEAK * x)


def _sigmoid(x):
    # Single EUP tanh (mathematically identical to logistic sigmoid).
    return 0.5 * jnp.tanh(0.5 * x) + 0.5


def critic_kernel(xin_ref,
                  w_ih_ref, w_hh_ref, b_lstm_ref,
                  w_dec_ref, b_dec_ref,
                  w1h_ref, w1d_ref, b1_ref,
                  w2_ref, b2_ref, w3_ref, b3_ref,
                  out_ref, *, act_dtype):
    # xin_ref: (B_tile, T*3 + 2), row = [obs(t0,f0..f2), obs(t1,..), ..., dec0, dec1]
    B = xin_ref.shape[0]
    T = (xin_ref.shape[1] - DEC_F) // OBS_F
    f32 = jnp.float32

    xin = xin_ref[...]              # one dense load of the activation slab
    w_ih = w_ih_ref[...]            # (3, 4*HP)  f32, gate k in lanes [k*HP, k*HP+H)
    w_hh = w_hh_ref[...]            # (HP, 4*HP) bf16, rows >= H are zero
    b_lstm = b_lstm_ref[...]        # (1, 4*HP)  f32 == b_ih + b_hh (padded lanes 0)

    h = jnp.zeros((B, HP), f32)
    c = jnp.zeros((B, HP), f32)

    # Serial recurrence, fully unrolled (T is static and small).
    # Per step: 3 VPU broadcast FMAs (input proj, overlaps with MXU) + one bf16 MXU
    # matmul on the critical chain + gate math.
    # TODO(synk): weight-stationary MXU (pltpu.matmul_push_rhs/acc_lhs/pop) for w_hh.
    for t in range(T):
        base = OBS_F * t
        x_proj = (xin[:, base + 0:base + 1] * w_ih[0:1, :]
                  + xin[:, base + 1:base + 2] * w_ih[1:2, :]
                  + xin[:, base + 2:base + 3] * w_ih[2:3, :]
                  + b_lstm)                                             # (B, 4*HP)
        gates = x_proj + jnp.dot(h.astype(jnp.bfloat16), w_hh,
                                 preferred_element_type=f32)            # (B, 4*HP)
        # Whole-vreg (128-lane) gate slices. Padded lanes of every gate are exactly
        # 0 -> sigmoid(0)=0.5, tanh(0)=0 -> padded lanes of c/h remain exactly 0.
        # Nonlinearities in act_dtype (bf16 on v6e/v7x halves EUP cycles).
        ga = gates.astype(act_dtype)
        i = _sigmoid(ga[:, 0 * HP:1 * HP]).astype(f32)
        f = _sigmoid(ga[:, 1 * HP:2 * HP]).astype(f32)
        g = jnp.tanh(ga[:, 2 * HP:3 * HP]).astype(f32)
        o = _sigmoid(ga[:, 3 * HP:4 * HP]).astype(f32)
        c = f * c + i * g                                               # f32 state
        h = o * jnp.tanh(c.astype(act_dtype)).astype(f32)               # (B, HP)

    # decision embedder: Linear(2, 64) + LeakyReLU via 2 VPU broadcast FMAs
    # (off the critical path; avoids a K=2 MXU matmul on an oddly-sliced operand).
    w_dec = w_dec_ref[...]                                              # (2, H)
    d0 = T * OBS_F
    dec_emb = _leaky_relu(xin[:, d0 + 0:d0 + 1] * w_dec[0:1, :]
                          + xin[:, d0 + 1:d0 + 2] * w_dec[1:2, :]
                          + b_dec_ref[...])                             # (B, H)

    # head layer 1 without a lane-boundary concat: W1 split into an h-half and a
    # dec-half, partial matmuls summed. w1h padded rows are zero -> no padding leak.
    z1 = _leaky_relu(
        jnp.dot(h, w1h_ref[...], preferred_element_type=f32)
        + jnp.dot(dec_emb, w1d_ref[...], preferred_element_type=f32)
        + b1_ref[...])                                                  # (B, 32)
    z2 = _leaky_relu(
        jnp.dot(z1, w2_ref[...], preferred_element_type=f32) + b2_ref[...])
    out_ref[...] = (
        jnp.dot(z2, w3_ref[...], preferred_element_type=f32) + b3_ref[...])


def init_params(key):
    """Deterministic parameter init with the same shapes as the PyTorch module."""
    ks = jax.random.split(key, 12)

    def unif(k, shape, fan_in):
        bound = 1.0 / jnp.sqrt(jnp.float32(fan_in))
        return jax.random.uniform(k, shape, jnp.float32, -bound, bound)

    return dict(
        # LSTM: weight_ih (4H, 3), weight_hh (4H, H), biases (4H,)
        w_ih=unif(ks[0], (4 * H, 3), H),
        w_hh=unif(ks[1], (4 * H, H), H),
        b_ih=unif(ks[2], (4 * H,), H),
        b_hh=unif(ks[3], (4 * H,), H),
        # decision embedder Linear(2, 64)
        w_dec=unif(ks[4], (H, 2), 2),
        b_dec=unif(ks[5], (H,), 2),
        # head
        w1=unif(ks[6], (32, 2 * H), 2 * H),
        b1=unif(ks[7], (32,), 2 * H),
        w2=unif(ks[8], (16, 32), 32),
        b2=unif(ks[9], (16,), 32),
        w3=unif(ks[10], (1, 16), 16),
        b3=unif(ks[11], (1,), 16),
    )


def _pad_gate_cols(w_t):
    """(in, 4H) -> (in, 4*HP): gate k occupies lanes [k*HP, k*HP + H); the rest is 0."""
    parts = [jnp.pad(w_t[:, k * H:(k + 1) * H], ((0, 0), (0, HP - H))) for k in range(4)]
    return jnp.concatenate(parts, axis=1)


def prepare_kernel_params(p):
    """Build the lane-padded / pre-transposed arrays the kernel consumes."""
    w_ih_t = p["w_ih"].T                        # (3, 4H)
    w_hh_t = p["w_hh"].T                        # (H, 4H)
    b_lstm = (p["b_ih"] + p["b_hh"])[None, :]   # (1, 4H)

    w_ih_p = _pad_gate_cols(w_ih_t)                                   # (3, 4*HP)
    w_hh_p = jnp.pad(_pad_gate_cols(w_hh_t), ((0, HP - H), (0, 0)))   # (HP, 4*HP)
    b_lstm_p = _pad_gate_cols(b_lstm)                                 # (1, 4*HP)

    w1_t = p["w1"].T                                       # (2H, 32)
    w1_h = jnp.pad(w1_t[:H, :], ((0, HP - H), (0, 0)))     # (HP, 32), rows >= H zero
    w1_d = w1_t[H:, :]                                     # (H, 32)

    return dict(
        w_ih=w_ih_p,
        w_hh=w_hh_p.astype(jnp.bfloat16),   # bf16 recurrent weights: 1 MXU pass/step
        b_lstm=b_lstm_p,
        w_dec=p["w_dec"].T, b_dec=p["b_dec"][None, :],
        w1_h=w1_h, w1_d=w1_d, b1=p["b1"][None, :],
        w2=p["w2"].T, b2=p["b2"][None, :],
        w3=p["w3"].T, b3=p["b3"][None, :],
    )


def _round_up(x, m):
    return ((x + m - 1) // m) * m


def _chip_generation():
    try:
        kind = jax.devices()[0].device_kind.lower()
    except Exception:
        return "unknown"
    if "v5" in kind and ("lite" in kind or "v5e" in kind):
        return "v5e"
    if "v6" in kind:
        return "v6e"
    if "v7" in kind or "7x" in kind:
        return "v7x"
    return "unknown"


def _select_tiling(batch, gen):
    """Chip-aware batch tile: 256 on v6e/v7x (256-wide MXU), 128 on v5e/unknown.
    On v7x, prefer >= 2 grid steps so both TensorCores get work."""
    b8 = max(8, _round_up(batch, 8))
    tile_cap = 256 if gen in ("v6e", "v7x") else 128
    num_tc = 2 if gen == "v7x" else 1
    if b8 <= tile_cap:
        b_tile = b8
        if num_tc > 1 and b8 >= 16:
            b_tile = _round_up(b8 // 2, 8)
    else:
        b_tile = tile_cap
    b_pad = _round_up(b8, b_tile)
    return b_tile, b_pad


def critic_forward(kparams, observations, decisions, *, act_dtype=None, b_tile=None):
    """observations: (B, T, 3), decisions: (B, 2) -> (B,)"""
    B, T, F = observations.shape
    assert F == OBS_F and decisions.shape == (B, DEC_F)

    gen = _chip_generation()
    if act_dtype is None:
        # bf16 nonlinearities only where the EUP/VPU are bf16-capable.
        act_dtype = jnp.bfloat16 if gen in ("v6e", "v7x") else jnp.float32
    if b_tile is None:
        b_tile, b_pad = _select_tiling(B, gen)
    else:
        b_pad = _round_up(max(B, b_tile), b_tile)

    # Batch-major lane-packed activation slab: one dense DMA per batch tile.
    obs_flat = observations.astype(jnp.float32).reshape(B, T * OBS_F)
    xin = jnp.concatenate([obs_flat, decisions.astype(jnp.float32)], axis=1)
    xin = jnp.pad(xin, ((0, b_pad - B), (0, 0)))             # (b_pad, T*3 + 2)

    weight_names = ("w_ih", "w_hh", "b_lstm", "w_dec", "b_dec",
                    "w1_h", "w1_d", "b1", "w2", "b2", "w3", "b3")
    weights = tuple(kparams[n] for n in weight_names)

    # Weights: whole arrays resident in VMEM (tiny); activations tiled over batch.
    # VMEM footprint is far below the scoped default on every chip, so no explicit
    # vmem_limit_bytes is needed even on v7x's 64 MiB VMEM.
    vmem_full = pl.BlockSpec(memory_space=pltpu.MemorySpace.VMEM)

    out = pl.pallas_call(
        functools.partial(critic_kernel, act_dtype=act_dtype),
        out_shape=jax.ShapeDtypeStruct((b_pad, 1), jnp.float32),
        grid=(b_pad // b_tile,),
        in_specs=[pl.BlockSpec((b_tile, T * OBS_F + DEC_F), lambda b: (b, 0))]
                 + [vmem_full] * len(weights),
        out_specs=pl.BlockSpec((b_tile, 1), lambda b: (b, 0)),
        compiler_params=pltpu.CompilerParams(
            dimension_semantics=("parallel",)),              # shards across TCs on v7x
    )(xin, *weights)
    return out[:B, 0]   # squeeze(1), drop batch padding


def critic_reference(p, observations, decisions):
    """Pure-JAX reference with the original (unpadded, f32) parameters."""
    B, T, _ = observations.shape
    w_ih_t = p["w_ih"].T
    w_hh_t = p["w_hh"].T
    b_lstm = (p["b_ih"] + p["b_hh"])[None, :]
    h = jnp.zeros((B, H), jnp.float32)
    c = jnp.zeros((B, H), jnp.float32)
    for t in range(T):
        gates = observations[:, t, :] @ w_ih_t + h @ w_hh_t + b_lstm
        i = jax.nn.sigmoid(gates[:, :H])
        f = jax.nn.sigmoid(gates[:, H:2 * H])
        g = jnp.tanh(gates[:, 2 * H:3 * H])
        o = jax.nn.sigmoid(gates[:, 3 * H:])
        c = f * c + i * g
        h = o * jnp.tanh(c)
    dec_emb = _leaky_relu(decisions @ p["w_dec"].T + p["b_dec"][None, :])
    comb = jnp.concatenate([h, dec_emb], axis=1)
    z1 = _leaky_relu(comb @ p["w1"].T + p["b1"][None, :])
    z2 = _leaky_relu(z1 @ p["w2"].T + p["b2"][None, :])
    return (z2 @ p["w3"].T + p["b3"][None, :])[:, 0]


if __name__ == "__main__":
    key = jax.random.PRNGKey(0)
    k_params, k_obs, k_dec = jax.random.split(key, 3)

    B, T = 2, 8
    observations = jax.random.normal(k_obs, (B, T, 3), jnp.float32)
    decisions = jax.random.normal(k_dec, (B, 2), jnp.float32)

    raw_params = init_params(k_params)
    kparams = prepare_kernel_params(raw_params)

    out = critic_forward(kparams, observations, decisions)
    out = jax.block_until_ready(out)

    ref = critic_reference(raw_params, observations, decisions)
    assert out.shape == (B,)
    # bf16 recurrent matmul + (on v6e/v7x) bf16 gate nonlinearities compound rounding
    # over T steps -> looser bar than a pure-f32 comparison.
    assert jnp.allclose(out, ref, rtol=3e-2, atol=3e-2), (out, ref)

    print("KERNEL_OK")
</pallas_src>

<mosaic_0001>
module attributes {stable_mosaic.version = 11 : i64} {
  func.func @critic_kernel(%arg0: i32, %arg1: memref<8x26xf32, #tpu.memory_space<vmem>>, %arg2: memref<3x512xf32, #tpu.memory_space<vmem>>, %arg3: memref<128x512xbf16, #tpu.memory_space<vmem>>, %arg4: memref<1x512xf32, #tpu.memory_space<vmem>>, %arg5: memref<2x64xf32, #tpu.memory_space<vmem>>, %arg6: memref<1x64xf32, #tpu.memory_space<vmem>>, %arg7: memref<128x32xf32, #tpu.memory_space<vmem>>, %arg8: memref<64x32xf32, #tpu.memory_space<vmem>>, %arg9: memref<1x32xf32, #tpu.memory_space<vmem>>, %arg10: memref<32x16xf32, #tpu.memory_space<vmem>>, %arg11: memref<1x16xf32, #tpu.memory_space<vmem>>, %arg12: memref<16x1xf32, #tpu.memory_space<vmem>>, %arg13: memref<1x1xf32, #tpu.memory_space<vmem>>, %arg14: memref<8x1xf32, #tpu.memory_space<vmem>>) attributes {dimension_semantics = [#tpu.dimension_semantics<parallel>], iteration_bounds = array<i64: 1>, scalar_prefetch = 0 : i64, scratch_operands = 0 : i64, tpu.core_type = #tpu.core_type<tc>, window_params = [{transform_indices = @transform_0, window_bounds = array<i64: 8, 26>}, {pipeline_mode = #tpu.pipeline_mode<synchronous>, transform_indices = @transform_1, window_bounds = array<i64: 3, 512>}, {pipeline_mode = #tpu.pipeline_mode<synchronous>, transform_indices = @transform_2, window_bounds = array<i64: 128, 512>}, {pipeline_mode = #tpu.pipeline_mode<synchronous>, transform_indices = @transform_3, window_bounds = array<i64: 1, 512>}, {pipeline_mode = #tpu.pipeline_mode<synchronous>, transform_indices = @transform_4, window_bounds = array<i64: 2, 64>}, {pipeline_mode = #tpu.pipeline_mode<synchronous>, transform_indices = @transform_5, window_bounds = array<i64: 1, 64>}, {pipeline_mode = #tpu.pipeline_mode<synchronous>, transform_indices = @transform_6, window_bounds = array<i64: 128, 32>}, {pipeline_mode = #tpu.pipeline_mode<synchronous>, transform_indices = @transform_7, window_bounds = array<i64: 64, 32>}, {pipeline_mode = #tpu.pipeline_mode<synchronous>, transform_indices = @transform_8, window_bounds = array<i64: 1, 32>}, {pipeline_mode = #tpu.pipeline_mode<synchronous>, transform_indices = @transform_9, window_bounds = array<i64: 32, 16>}, {pipeline_mode = #tpu.pipeline_mode<synchronous>, transform_indices = @transform_10, window_bounds = array<i64: 1, 16>}, {pipeline_mode = #tpu.pipeline_mode<synchronous>, transform_indices = @transform_11, window_bounds = array<i64: 16, 1>}, {pipeline_mode = #tpu.pipeline_mode<synchronous>, transform_indices = @transform_12, window_bounds = array<i64: 1, 1>}, {transform_indices = @transform_13, window_bounds = array<i64: 8, 1>}]} {
    %c0 = arith.constant 0 : index
    %c0_0 = arith.constant 0 : index
    %0 = vector.load %arg1[%c0, %c0_0] : memref<8x26xf32, #tpu.memory_space<vmem>>, vector<8x26xf32>
    %c0_1 = arith.constant 0 : index
    %c0_2 = arith.constant 0 : index
    %1 = vector.load %arg2[%c0_1, %c0_2] : memref<3x512xf32, #tpu.memory_space<vmem>>, vector<3x512xf32>
    %c0_3 = arith.constant 0 : index
    %c0_4 = arith.constant 0 : index
    %2 = vector.load %arg3[%c0_3, %c0_4] : memref<128x512xbf16, #tpu.memory_space<vmem>>, vector<128x512xbf16>
    %c0_5 = arith.constant 0 : index
    %c0_6 = arith.constant 0 : index
    %3 = vector.load %arg4[%c0_5, %c0_6] : memref<1x512xf32, #tpu.memory_space<vmem>>, vector<1x512xf32>
    %cst = arith.constant 0.000000e+00 : f32
    %4 = vector.broadcast %cst : f32 to vector<8x128xf32>
    %cst_7 = arith.constant 0.000000e+00 : f32
    %5 = vector.broadcast %cst_7 : f32 to vector<8x128xf32>
    %6 = vector.extract_strided_slice %0 {offsets = [0, 0], sizes = [8, 1], strides = [1, 1]} : vector<8x26xf32> to vector<8x1xf32>
    %7 = vector.extract_strided_slice %1 {offsets = [0, 0], sizes = [1, 512], strides = [1, 1]} : vector<3x512xf32> to vector<1x512xf32>
    %8 = vector.broadcast %6 : vector<8x1xf32> to vector<8x512xf32>
    %9 = vector.broadcast %7 : vector<1x512xf32> to vector<8x512xf32>
    %10 = arith.mulf %8, %9 : vector<8x512xf32>
    %11 = vector.extract_strided_slice %0 {offsets = [0, 1], sizes = [8, 1], strides = [1, 1]} : vector<8x26xf32> to vector<8x1xf32>
    %12 = vector.extract_strided_slice %1 {offsets = [1, 0], sizes = [1, 512], strides = [1, 1]} : vector<3x512xf32> to vector<1x512xf32>
    %13 = vector.broadcast %11 : vector<8x1xf32> to vector<8x512xf32>
    %14 = vector.broadcast %12 : vector<1x512xf32> to vector<8x512xf32>
    %15 = arith.mulf %13, %14 : vector<8x512xf32>
    %16 = arith.addf %10, %15 : vector<8x512xf32>
    %17 = vector.extract_strided_slice %0 {offsets = [0, 2], sizes = [8, 1], strides = [1, 1]} : vector<8x26xf32> to vector<8x1xf32>
    %18 = vector.extract_strided_slice %1 {offsets = [2, 0], sizes = [1, 512], strides = [1, 1]} : vector<3x512xf32> to vector<1x512xf32>
    %19 = vector.broadcast %17 : vector<8x1xf32> to vector<8x512xf32>
    %20 = vector.broadcast %18 : vector<1x512xf32> to vector<8x512xf32>
    %21 = arith.mulf %19, %20 : vector<8x512xf32>
    %22 = arith.addf %16, %21 : vector<8x512xf32>
    %23 = vector.broadcast %3 : vector<1x512xf32> to vector<8x512xf32>
    %24 = arith.addf %22, %23 : vector<8x512xf32>
    %25 = arith.truncf %4 : vector<8x128xf32> to vector<8x128xbf16>
    %cst_8 = arith.constant dense<0.000000e+00> : vector<8x512xf32>
    %26 = tpu.matmul %25, %2, %cst_8 {dimension_numbers = #tpu.dot_dimension_numbers<[1], [0], [0], [1], [0, 0, 1, 1], [], []>} : vector<8x128xbf16>, vector<128x512xbf16>, vector<8x512xf32> -> vector<8x512xf32>
    %27 = arith.addf %24, %26 : vector<8x512xf32>
    %28 = vector.extract_strided_slice %27 {offsets = [0, 0], sizes = [8, 128], strides = [1, 1]} : vector<8x512xf32> to vector<8x128xf32>
    %cst_9 = arith.constant 5.000000e-01 : f32
    %29 = vector.broadcast %cst_9 : f32 to vector<8x128xf32>
    %30 = arith.mulf %29, %28 : vector<8x128xf32>
    %31 = math.tanh %30 : vector<8x128xf32>
    %cst_10 = arith.constant 5.000000e-01 : f32
    %32 = vector.broadcast %cst_10 : f32 to vector<8x128xf32>
    %33 = arith.mulf %32, %31 : vector<8x128xf32>
    %cst_11 = arith.constant 5.000000e-01 : f32
    %34 = vector.broadcast %cst_11 : f32 to vector<8x128xf32>
    %35 = arith.addf %33, %34 : vector<8x128xf32>
    %36 = vector.extract_strided_slice %27 {offsets = [0, 128], sizes = [8, 128], strides = [1, 1]} : vector<8x512xf32> to vector<8x128xf32>
    %cst_12 = arith.constant 5.000000e-01 : f32
    %37 = vector.broadcast %cst_12 : f32 to vector<8x128xf32>
    %38 = arith.mulf %37, %36 : vector<8x128xf32>
    %39 = math.tanh %38 : vector<8x128xf32>
    %cst_13 = arith.constant 5.000000e-01 : f32
    %40 = vector.broadcast %cst_13 : f32 to vector<8x128xf32>
    %41 = arith.mulf %40, %39 : vector<8x128xf32>
    %cst_14 = arith.constant 5.000000e-01 : f32
    %42 = vector.broadcast %cst_14 : f32 to vector<8x128xf32>
    %43 = arith.addf %41, %42 : vector<8x128xf32>
    %44 = vector.extract_strided_slice %27 {offsets = [0, 256], sizes = [8, 128], strides = [1, 1]} : vector<8x512xf32> to vector<8x128xf32>
    %45 = math.tanh %44 : vector<8x128xf32>
    %46 = vector.extract_strided_slice %27 {offsets = [0, 384], sizes = [8, 128], strides = [1, 1]} : vector<8x512xf32> to vector<8x128xf32>
    %cst_15 = arith.constant 5.000000e-01 : f32
    %47 = vector.broadcast %cst_15 : f32 to vector<8x128xf32>
    %48 = arith.mulf %47, %46 : vector<8x128xf32>
    %49 = math.tanh %48 : vector<8x128xf32>
    %cst_16 = arith.constant 5.000000e-01 : f32
    %50 = vector.broadcast %cst_16 : f32 to vector<8x128xf32>
    %51 = arith.mulf %50, %49 : vector<8x128xf32>
    %cst_17 = arith.constant 5.000000e-01 : f32
    %52 = vector.broadcast %cst_17 : f32 to vector<8x128xf32>
    %53 = arith.addf %51, %52 : vector<8x128xf32>
    %54 = arith.mulf %43, %5 : vector<8x128xf32>
    %55 = arith.mulf %35, %45 : vector<8x128xf32>
    %56 = arith.addf %54, %55 : vector<8x128xf32>
    %57 = math.tanh %56 : vector<8x128xf32>
    %58 = arith.mulf %53, %57 : vector<8x128xf32>
    %59 = vector.extract_strided_slice %0 {offsets = [0, 3], sizes = [8, 1], strides = [1, 1]} : vector<8x26xf32> to vector<8x1xf32>
    %60 = vector.extract_strided_slice %1 {offsets = [0, 0], sizes = [1, 512], strides = [1, 1]} : vector<3x512xf32> to vector<1x512xf32>
    %61 = vector.broadcast %59 : vector<8x1xf32> to vector<8x512xf32>
    %62 = vector.broadcast %60 : vector<1x512xf32> to vector<8x512xf32>
    %63 = arith.mulf %61, %62 : vector<8x512xf32>
    %64 = vector.extract_strided_slice %0 {offsets = [0, 4], sizes = [8, 1], strides = [1, 1]} : vector<8x26xf32> to vector<8x1xf32>
    %65 = vector.extract_strided_slice %1 {offsets = [1, 0], sizes = [1, 512], strides = [1, 1]} : vector<3x512xf32> to vector<1x512xf32>
    %66 = vector.broadcast %64 : vector<8x1xf32> to vector<8x512xf32>
    %67 = vector.broadcast %65 : vector<1x512xf32> to vector<8x512xf32>
    %68 = arith.mulf %66, %67 : vector<8x512xf32>
    %69 = arith.addf %63, %68 : vector<8x512xf32>
    %70 = vector.extract_strided_slice %0 {offsets = [0, 5], sizes = [8, 1], strides = [1, 1]} : vector<8x26xf32> to vector<8x1xf32>
    %71 = vector.extract_strided_slice %1 {offsets = [2, 0], sizes = [1, 512], strides = [1, 1]} : vector<3x512xf32> to vector<1x512xf32>
    %72 = vector.broadcast %70 : vector<8x1xf32> to vector<8x512xf32>
    %73 = vector.broadcast %71 : vector<1x512xf32> to vector<8x512xf32>
    %74 = arith.mulf %72, %73 : vector<8x512xf32>
    %75 = arith.addf %69, %74 : vector<8x512xf32>
    %76 = vector.broadcast %3 : vector<1x512xf32> to vector<8x512xf32>
    %77 = arith.addf %75, %76 : vector<8x512xf32>
    %78 = arith.truncf %58 : vector<8x128xf32> to vector<8x128xbf16>
    %cst_18 = arith.constant dense<0.000000e+00> : vector<8x512xf32>
    %79 = tpu.matmul %78, %2, %cst_18 {dimension_numbers = #tpu.dot_dimension_numbers<[1], [0], [0], [1], [0, 0, 1, 1], [], []>} : vector<8x128xbf16>, vector<128x512xbf16>, vector<8x512xf32> -> vector<8x512xf32>
    %80 = arith.addf %77, %79 : vector<8x512xf32>
    %81 = vector.extract_strided_slice %80 {offsets = [0, 0], sizes = [8, 128], strides = [1, 1]} : vector<8x512xf32> to vector<8x128xf32>
    %cst_19 = arith.constant 5.000000e-01 : f32
    %82 = vector.broadcast %cst_19 : f32 to vector<8x128xf32>
    %83 = arith.mulf %82, %81 : vector<8x128xf32>
    %84 = math.tanh %83 : vector<8x128xf32>
    %cst_20 = arith.constant 5.000000e-01 : f32
    %85 = vector.broadcast %cst_20 : f32 to vector<8x128xf32>
    %86 = arith.mulf %85, %84 : vector<8x128xf32>
    %cst_21 = arith.constant 5.000000e-01 : f32
    %87 = vector.broadcast %cst_21 : f32 to vector<8x128xf32>
    %88 = arith.addf %86, %87 : vector<8x128xf32>
    %89 = vector.extract_strided_slice %80 {offsets = [0, 128], sizes = [8, 128], strides = [1, 1]} : vector<8x512xf32> to vector<8x128xf32>
    %cst_22 = arith.constant 5.000000e-01 : f32
    %90 = vector.broadcast %cst_22 : f32 to vector<8x128xf32>
    %91 = arith.mulf %90, %89 : vector<8x128xf32>
    %92 = math.tanh %91 : vector<8x128xf32>
    %cst_23 = arith.constant 5.000000e-01 : f32
    %93 = vector.broadcast %cst_23 : f32 to vector<8x128xf32>
    %94 = arith.mulf %93, %92 : vector<8x128xf32>
    %cst_24 = arith.constant 5.000000e-01 : f32
    %95 = vector.broadcast %cst_24 : f32 to vector<8x128xf32>
    %96 = arith.addf %94, %95 : vector<8x128xf32>
    %97 = vector.extract_strided_slice %80 {offsets = [0, 256], sizes = [8, 128], strides = [1, 1]} : vector<8x512xf32> to vector<8x128xf32>
    %98 = math.tanh %97 : vector<8x128xf32>
    %99 = vector.extract_strided_slice %80 {offsets = [0, 384], sizes = [8, 128], strides = [1, 1]} : vector<8x512xf32> to vector<8x128xf32>
    %cst_25 = arith.constant 5.000000e-01 : f32
    %100 = vector.broadcast %cst_25 : f32 to vector<8x128xf32>
    %101 = arith.mulf %100, %99 : vector<8x128xf32>
    %102 = math.tanh %101 : vector<8x128xf32>
    %cst_26 = arith.constant 5.000000e-01 : f32
    %103 = vector.broadcast %cst_26 : f32 to vector<8x128xf32>
    %104 = arith.mulf %103, %102 : vector<8x128xf32>
    %cst_27 = arith.constant 5.000000e-01 : f32
    %105 = vector.broadcast %cst_27 : f32 to vector<8x128xf32>
    %106 = arith.addf %104, %105 : vector<8x128xf32>
    %107 = arith.mulf %96, %56 : vector<8x128xf32>
    %108 = arith.mulf %88, %98 : vector<8x128xf32>
    %109 = arith.addf %107, %108 : vector<8x128xf32>
    %110 = math.tanh %109 : vector<8x128xf32>
    %111 = arith.mulf %106, %110 : vector<8x128xf32>
    %112 = vector.extract_strided_slice %0 {offsets = [0, 6], sizes = [8, 1], strides = [1, 1]} : vector<8x26xf32> to vector<8x1xf32>
    %113 = vector.extract_strided_slice %1 {offsets = [0, 0], sizes = [1, 512], strides = [1, 1]} : vector<3x512xf32> to vector<1x512xf32>
    %114 = vector.broadcast %112 : vector<8x1xf32> to vector<8x512xf32>
    %115 = vector.broadcast %113 : vector<1x512xf32> to vector<8x512xf32>
    %116 = arith.mulf %114, %115 : vector<8x512xf32>
    %117 = vector.extract_strided_slice %0 {offsets = [0, 7], sizes = [8, 1], strides = [1, 1]} : vector<8x26xf32> to vector<8x1xf32>
    %118 = vector.extract_strided_slice %1 {offsets = [1, 0], sizes = [1, 512], strides = [1, 1]} : vector<3x512xf32> to vector<1x512xf32>
    %119 = vector.broadcast %117 : vector<8x1xf32> to vector<8x512xf32>
    %120 = vector.broadcast %118 : vector<1x512xf32> to vector<8x512xf32>
    %121 = arith.mulf %119, %120 : vector<8x512xf32>
    %122 = arith.addf %116, %121 : vector<8x512xf32>
    %123 = vector.extract_strided_slice %0 {offsets = [0, 8], sizes = [8, 1], strides = [1, 1]} : vector<8x26xf32> to vector<8x1xf32>
    %124 = vector.extract_strided_slice %1 {offsets = [2, 0], sizes = [1, 512], strides = [1, 1]} : vector<3x512xf32> to vector<1x512xf32>
    %125 = vector.broadcast %123 : vector<8x1xf32> to vector<8x512xf32>
    %126 = vector.broadcast %124 : vector<1x512xf32> to vector<8x512xf32>
    %127 = arith.mulf %125, %126 : vector<8x512xf32>
    %128 = arith.addf %122, %127 : vector<8x512xf32>
    %129 = vector.broadcast %3 : vector<1x512xf32> to vector<8x512xf32>
    %130 = arith.addf %128, %129 : vector<8x512xf32>
    %131 = arith.truncf %111 : vector<8x128xf32> to vector<8x128xbf16>
    %cst_28 = arith.constant dense<0.000000e+00> : vector<8x512xf32>
    %132 = tpu.matmul %131, %2, %cst_28 {dimension_numbers = #tpu.dot_dimension_numbers<[1], [0], [0], [1], [0, 0, 1, 1], [], []>} : vector<8x128xbf16>, vector<128x512xbf16>, vector<8x512xf32> -> vector<8x512xf32>
    %133 = arith.addf %130, %132 : vector<8x512xf32>
    %134 = vector.extract_strided_slice %133 {offsets = [0, 0], sizes = [8, 128], strides = [1, 1]} : vector<8x512xf32> to vector<8x128xf32>
    %cst_29 = arith.constant 5.000000e-01 : f32
    %135 = vector.broadcast %cst_29 : f32 to vector<8x128xf32>
    %136 = arith.mulf %135, %134 : vector<8x128xf32>
    %137 = math.tanh %136 : vector<8x128xf32>
    %cst_30 = arith.constant 5.000000e-01 : f32
    %138 = vector.broadcast %cst_30 : f32 to vector<8x128xf32>
    %139 = arith.mulf %138, %137 : vector<8x128xf32>
    %cst_31 = arith.constant 5.000000e-01 : f32
    %140 = vector.broadcast %cst_31 : f32 to vector<8x128xf32>
    %141 = arith.addf %139, %140 : vector<8x128xf32>
    %142 = vector.extract_strided_slice %133 {offsets = [0, 128], sizes = [8, 128], strides = [1, 1]} : vector<8x512xf32> to vector<8x128xf32>
    %cst_32 = arith.constant 5.000000e-01 : f32
    %143 = vector.broadcast %cst_32 : f32 to vector<8x128xf32>
    %144 = arith.mulf %143, %142 : vector<8x128xf32>
    %145 = math.tanh %144 : vector<8x128xf32>
    %cst_33 = arith.constant 5.000000e-01 : f32
    %146 = vector.broadcast %cst_33 : f32 to vector<8x128xf32>
    %147 = arith.mulf %146, %145 : vector<8x128xf32>
    %cst_34 = arith.constant 5.000000e-01 : f32
    %148 = vector.broadcast %cst_34 : f32 to vector<8x128xf32>
    %149 = arith.addf %147, %148 : vector<8x128xf32>
    %150 = vector.extract_strided_slice %133 {offsets = [0, 256], sizes = [8, 128], strides = [1, 1]} : vector<8x512xf32> to vector<8x128xf32>
    %151 = math.tanh %150 : vector<8x128xf32>
    %152 = vector.extract_strided_slice %133 {offsets = [0, 384], sizes = [8, 128], strides = [1, 1]} : vector<8x512xf32> to vector<8x128xf32>
    %cst_35 = arith.constant 5.000000e-01 : f32
    %153 = vector.broadcast %cst_35 : f32 to vector<8x128xf32>
    %154 = arith.mulf %153, %152 : vector<8x128xf32>
    %155 = math.tanh %154 : vector<8x128xf32>
    %cst_36 = arith.constant 5.000000e-01 : f32
    %156 = vector.broadcast %cst_36 : f32 to vector<8x128xf32>
    %157 = arith.mulf %156, %155 : vector<8x128xf32>
    %cst_37 = arith.constant 5.000000e-01 : f32
    %158 = vector.broadcast %cst_37 : f32 to vector<8x128xf32>
    %159 = arith.addf %157, %158 : vector<8x128xf32>
    %160 = arith.mulf %149, %109 : vector<8x128xf32>
    %161 = arith.mulf %141, %151 : vector<8x128xf32>
    %162 = arith.addf %160, %161 : vector<8x128xf32>
    %163 = math.tanh %162 : vector<8x128xf32>
    %164 = arith.mulf %159, %163 : vector<8x128xf32>
    %165 = vector.extract_strided_slice %0 {offsets = [0, 9], sizes = [8, 1], strides = [1, 1]} : vector<8x26xf32> to vector<8x1xf32>
    %166 = vector.extract_strided_slice %1 {offsets = [0, 0], sizes = [1, 512], strides = [1, 1]} : vector<3x512xf32> to vector<1x512xf32>
    %167 = vector.broadcast %165 : vector<8x1xf32> to vector<8x512xf32>
    %168 = vector.broadcast %166 : vector<1x512xf32> to vector<8x512xf32>
    %169 = arith.mulf %167, %168 : vector<8x512xf32>
    %170 = vector.extract_strided_slice %0 {offsets = [0, 10], sizes = [8, 1], strides = [1, 1]} : vector<8x26xf32> to vector<8x1xf32>
    %171 = vector.extract_strided_slice %1 {offsets = [1, 0], sizes = [1, 512], strides = [1, 1]} : vector<3x512xf32> to vector<1x512xf32>
    %172 = vector.broadcast %170 : vector<8x1xf32> to vector<8x512xf32>
    %173 = vector.broadcast %171 : vector<1x512xf32> to vector<8x512xf32>
    %174 = arith.mulf %172, %173 : vector<8x512xf32>
    %175 = arith.addf %169, %174 : vector<8x512xf32>
    %176 = vector.extract_strided_slice %0 {offsets = [0, 11], sizes = [8, 1], strides = [1, 1]} : vector<8x26xf32> to vector<8x1xf32>
    %177 = vector.extract_strided_slice %1 {offsets = [2, 0], sizes = [1, 512], strides = [1, 1]} : vector<3x512xf32> to vector<1x512xf32>
    %178 = vector.broadcast %176 : vector<8x1xf32> to vector<8x512xf32>
    %179 = vector.broadcast %177 : vector<1x512xf32> to vector<8x512xf32>
    %180 = arith.mulf %178, %179 : vector<8x512xf32>
    %181 = arith.addf %175, %180 : vector<8x512xf32>
    %182 = vector.broadcast %3 : vector<1x512xf32> to vector<8x512xf32>
    %183 = arith.addf %181, %182 : vector<8x512xf32>
    %184 = arith.truncf %164 : vector<8x128xf32> to vector<8x128xbf16>
    %cst_38 = arith.constant dense<0.000000e+00> : vector<8x512xf32>
    %185 = tpu.matmul %184, %2, %cst_38 {dimension_numbers = #tpu.dot_dimension_numbers<[1], [0], [0], [1], [0, 0, 1, 1], [], []>} : vector<8x128xbf16>, vector<128x512xbf16>, vector<8x512xf32> -> vector<8x512xf32>
    %186 = arith.addf %183, %185 : vector<8x512xf32>
    %187 = vector.extract_strided_slice %186 {offsets = [0, 0], sizes = [8, 128], strides = [1, 1]} : vector<8x512xf32> to vector<8x128xf32>
    %cst_39 = arith.constant 5.000000e-01 : f32
    %188 = vector.broadcast %cst_39 : f32 to vector<8x128xf32>
    %189 = arith.mulf %188, %187 : vector<8x128xf32>
    %190 = math.tanh %189 : vector<8x128xf32>
    %cst_40 = arith.constant 5.000000e-01 : f32
    %191 = vector.broadcast %cst_40 : f32 to vector<8x128xf32>
    %192 = arith.mulf %191, %190 : vector<8x128xf32>
    %cst_41 = arith.constant 5.000000e-01 : f32
    %193 = vector.broadcast %cst_41 : f32 to vector<8x128xf32>
    %194 = arith.addf %192, %193 : vector<8x128xf32>
    %195 = vector.extract_strided_slice %186 {offsets = [0, 128], sizes = [8, 128], strides = [1, 1]} : vector<8x512xf32> to vector<8x128xf32>
    %cst_42 = arith.constant 5.000000e-01 : f32
    %196 = vector.broadcast %cst_42 : f32 to vector<8x128xf32>
    %197 = arith.mulf %196, %195 : vector<8x128xf32>
    %198 = math.tanh %197 : vector<8x128xf32>
    %cst_43 = arith.constant 5.000000e-01 : f32
    %199 = vector.broadcast %cst_43 : f32 to vector<8x128xf32>
    %200 = arith.mulf %199, %198 : vector<8x128xf32>
    %cst_44 = arith.constant 5.000000e-01 : f32
    %201 = vector.broadcast %cst_44 : f32 to vector<8x128xf32>
    %202 = arith.addf %200, %201 : vector<8x128xf32>
    %203 = vector.extract_strided_slice %186 {offsets = [0, 256], sizes = [8, 128], strides = [1, 1]} : vector<8x512xf32> to vector<8x128xf32>
    %204 = math.tanh %203 : vector<8x128xf32>
    %205 = vector.extract_strided_slice %186 {offsets = [0, 384], sizes = [8, 128], strides = [1, 1]} : vector<8x512xf32> to vector<8x128xf32>
    %cst_45 = arith.constant 5.000000e-01 : f32
    %206 = vector.broadcast %cst_45 : f32 to vector<8x128xf32>
    %207 = arith.mulf %206, %205 : vector<8x128xf32>
    %208 = math.tanh %207 : vector<8x128xf32>
    %cst_46 = arith.constant 5.000000e-01 : f32
    %209 = vector.broadcast %cst_46 : f32 to vector<8x128xf32>
    %210 = arith.mulf %209, %208 : vector<8x128xf32>
    %cst_47 = arith.constant 5.000000e-01 : f32
    %211 = vector.broadcast %cst_47 : f32 to vector<8x128xf32>
    %212 = arith.addf %210, %211 : vector<8x128xf32>
    %213 = arith.mulf %202, %162 : vector<8x128xf32>
    %214 = arith.mulf %194, %204 : vector<8x128xf32>
    %215 = arith.addf %213, %214 : vector<8x128xf32>
    %216 = math.tanh %215 : vector<8x128xf32>
    %217 = arith.mulf %212, %216 : vector<8x128xf32>
    %218 = vector.extract_strided_slice %0 {offsets = [0, 12], sizes = [8, 1], strides = [1, 1]} : vector<8x26xf32> to vector<8x1xf32>
    %219 = vector.extract_strided_slice %1 {offsets = [0, 0], sizes = [1, 512], strides = [1, 1]} : vector<3x512xf32> to vector<1x512xf32>
    %220 = vector.broadcast %218 : vector<8x1xf32> to vector<8x512xf32>
    %221 = vector.broadcast %219 : vector<1x512xf32> to vector<8x512xf32>
    %222 = arith.mulf %220, %221 : vector<8x512xf32>
    %223 = vector.extract_strided_slice %0 {offsets = [0, 13], sizes = [8, 1], strides = [1, 1]} : vector<8x26xf32> to vector<8x1xf32>
    %224 = vector.extract_strided_slice %1 {offsets = [1, 0], sizes = [1, 512], strides = [1, 1]} : vector<3x512xf32> to vector<1x512xf32>
    %225 = vector.broadcast %223 : vector<8x1xf32> to vector<8x512xf32>
    %226 = vector.broadcast %224 : vector<1x512xf32> to vector<8x512xf32>
    %227 = arith.mulf %225, %226 : vector<8x512xf32>
    %228 = arith.addf %222, %227 : vector<8x512xf32>
    %229 = vector.extract_strided_slice %0 {offsets = [0, 14], sizes = [8, 1], strides = [1, 1]} : vector<8x26xf32> to vector<8x1xf32>
    %230 = vector.extract_strided_slice %1 {offsets = [2, 0], sizes = [1, 512], strides = [1, 1]} : vector<3x512xf32> to vector<1x512xf32>
    %231 = vector.broadcast %229 : vector<8x1xf32> to vector<8x512xf32>
    %232 = vector.broadcast %230 : vector<1x512xf32> to vector<8x512xf32>
    %233 = arith.mulf %231, %232 : vector<8x512xf32>
    %234 = arith.addf %228, %233 : vector<8x512xf32>
    %235 = vector.broadcast %3 : vector<1x512xf32> to vector<8x512xf32>
    %236 = arith.addf %234, %235 : vector<8x512xf32>
    %237 = arith.truncf %217 : vector<8x128xf32> to vector<8x128xbf16>
    %cst_48 = arith.constant dense<0.000000e+00> : vector<8x512xf32>
    %238 = tpu.matmul %237, %2, %cst_48 {dimension_numbers = #tpu.dot_dimension_numbers<[1], [0], [0], [1], [0, 0, 1, 1], [], []>} : vector<8x128xbf16>, vector<128x512xbf16>, vector<8x512xf32> -> vector<8x512xf32>
    %239 = arith.addf %236, %238 : vector<8x512xf32>
    %240 = vector.extract_strided_slice %239 {offsets = [0, 0], sizes = [8, 128], strides = [1, 1]} : vector<8x512xf32> to vector<8x128xf32>
    %cst_49 = arith.constant 5.000000e-01 : f32
    %241 = vector.broadcast %cst_49 : f32 to vector<8x128xf32>
    %242 = arith.mulf %241, %240 : vector<8x128xf32>
    %243 = math.tanh %242 : vector<8x128xf32>
    %cst_50 = arith.constant 5.000000e-01 : f32
    %244 = vector.broadcast %cst_50 : f32 to vector<8x128xf32>
    %245 = arith.mulf %244, %243 : vector<8x128xf32>
    %cst_51 = arith.constant 5.000000e-01 : f32
    %246 = vector.broadcast %cst_51 : f32 to vector<8x128xf32>
    %247 = arith.addf %245, %246 : vector<8x128xf32>
    %248 = vector.extract_strided_slice %239 {offsets = [0, 128], sizes = [8, 128], strides = [1, 1]} : vector<8x512xf32> to vector<8x128xf32>
    %cst_52 = arith.constant 5.000000e-01 : f32
    %249 = vector.broadcast %cst_52 : f32 to vector<8x128xf32>
    %250 = arith.mulf %249, %248 : vector<8x128xf32>
    %251 = math.tanh %250 : vector<8x128xf32>
    %cst_53 = arith.constant 5.000000e-01 : f32
    %252 = vector.broadcast %cst_53 : f32 to vector<8x128xf32>
    %253 = arith.mulf %252, %251 : vector<8x128xf32>
    %cst_54 = arith.constant 5.000000e-01 : f32
    %254 = vector.broadcast %cst_54 : f32 to vector<8x128xf32>
    %255 = arith.addf %253, %254 : vector<8x128xf32>
    %256 = vector.extract_strided_slice %239 {offsets = [0, 256], sizes = [8, 128], strides = [1, 1]} : vector<8x512xf32> to vector<8x128xf32>
    %257 = math.tanh %256 : vector<8x128xf32>
    %258 = vector.extract_strided_slice %239 {offsets = [0, 384], sizes = [8, 128], strides = [1, 1]} : vector<8x512xf32> to vector<8x128xf32>
    %cst_55 = arith.constant 5.000000e-01 : f32
    %259 = vector.broadcast %cst_55 : f32 to vector<8x128xf32>
    %260 = arith.mulf %259, %258 : vector<8x128xf32>
    %261 = math.tanh %260 : vector<8x128xf32>
    %cst_56 = arith.constant 5.000000e-01 : f32
    %262 = vector.broadcast %cst_56 : f32 to vector<8x128xf32>
    %263 = arith.mulf %262, %261 : vector<8x128xf32>
    %cst_57 = arith.constant 5.000000e-01 : f32
    %264 = vector.broadcast %cst_57 : f32 to vector<8x128xf32>
    %265 = arith.addf %263, %264 : vector<8x128xf32>
    %266 = arith.mulf %255, %215 : vector<8x128xf32>
    %267 = arith.mulf %247, %257 : vector<8x128xf32>
    %268 = arith.addf %266, %267 : vector<8x128xf32>
    %269 = math.tanh %268 : vector<8x128xf32>
    %270 = arith.mulf %265, %269 : vector<8x128xf32>
    %271 = vector.extract_strided_slice %0 {offsets = [0, 15], sizes = [8, 1], strides = [1, 1]} : vector<8x26xf32> to vector<8x1xf32>
    %272 = vector.extract_strided_slice %1 {offsets = [0, 0], sizes = [1, 512], strides = [1, 1]} : vector<3x512xf32> to vector<1x512xf32>
    %273 = vector.broadcast %271 : vector<8x1xf32> to vector<8x512xf32>
    %274 = vector.broadcast %272 : vector<1x512xf32> to vector<8x512xf32>
    %275 = arith.mulf %273, %274 : vector<8x512xf32>
    %276 = vector.extract_strided_slice %0 {offsets = [0, 16], sizes = [8, 1], strides = [1, 1]} : vector<8x26xf32> to vector<8x1xf32>
    %277 = vector.extract_strided_slice %1 {offsets = [1, 0], sizes = [1, 512], strides = [1, 1]} : vector<3x512xf32> to vector<1x512xf32>
    %278 = vector.broadcast %276 : vector<8x1xf32> to vector<8x512xf32>
    %279 = vector.broadcast %277 : vector<1x512xf32> to vector<8x512xf32>
    %280 = arith.mulf %278, %279 : vector<8x512xf32>
    %281 = arith.addf %275, %280 : vector<8x512xf32>
    %282 = vector.extract_strided_slice %0 {offsets = [0, 17], sizes = [8, 1], strides = [1, 1]} : vector<8x26xf32> to vector<8x1xf32>
    %283 = vector.extract_strided_slice %1 {offsets = [2, 0], sizes = [1, 512], strides = [1, 1]} : vector<3x512xf32> to vector<1x512xf32>
    %284 = vector.broadcast %282 : vector<8x1xf32> to vector<8x512xf32>
    %285 = vector.broadcast %283 : vector<1x512xf32> to vector<8x512xf32>
    %286 = arith.mulf %284, %285 : vector<8x512xf32>
    %287 = arith.addf %281, %286 : vector<8x512xf32>
    %288 = vector.broadcast %3 : vector<1x512xf32> to vector<8x512xf32>
    %289 = arith.addf %287, %288 : vector<8x512xf32>
    %290 = arith.truncf %270 : vector<8x128xf32> to vector<8x128xbf16>
    %cst_58 = arith.constant dense<0.000000e+00> : vector<8x512xf32>
    %291 = tpu.matmul %290, %2, %cst_58 {dimension_numbers = #tpu.dot_dimension_numbers<[1], [0], [0], [1], [0, 0, 1, 1], [], []>} : vector<8x128xbf16>, vector<128x512xbf16>, vector<8x512xf32> -> vector<8x512xf32>
    %292 = arith.addf %289, %291 : vector<8x512xf32>
    %293 = vector.extract_strided_slice %292 {offsets = [0, 0], sizes = [8, 128], strides = [1, 1]} : vector<8x512xf32> to vector<8x128xf32>
    %cst_59 = arith.constant 5.000000e-01 : f32
    %294 = vector.broadcast %cst_59 : f32 to vector<8x128xf32>
    %295 = arith.mulf %294, %293 : vector<8x128xf32>
    %296 = math.tanh %295 : vector<8x128xf32>
    %cst_60 = arith.constant 5.000000e-01 : f32
    %297 = vector.broadcast %cst_60 : f32 to vector<8x128xf32>
    %298 = arith.mulf %297, %296 : vector<8x128xf32>
    %cst_61 = arith.constant 5.000000e-01 : f32
    %299 = vector.broadcast %cst_61 : f32 to vector<8x128xf32>
    %300 = arith.addf %298, %299 : vector<8x128xf32>
    %301 = vector.extract_strided_slice %292 {offsets = [0, 128], sizes = [8, 128], strides = [1, 1]} : vector<8x512xf32> to vector<8x128xf32>
    %cst_62 = arith.constant 5.000000e-01 : f32
    %302 = vector.broadcast %cst_62 : f32 to vector<8x128xf32>
    %303 = arith.mulf %302, %301 : vector<8x128xf32>
    %304 = math.tanh %303 : vector<8x128xf32>
    %cst_63 = arith.constant 5.000000e-01 : f32
    %305 = vector.broadcast %cst_63 : f32 to vector<8x128xf32>
    %306 = arith.mulf %305, %304 : vector<8x128xf32>
    %cst_64 = arith.constant 5.000000e-01 : f32
    %307 = vector.broadcast %cst_64 : f32 to vector<8x128xf32>
    %308 = arith.addf %306, %307 : vector<8x128xf32>
    %309 = vector.extract_strided_slice %292 {offsets = [0, 256], sizes = [8, 128], strides = [1, 1]} : vector<8x512xf32> to vector<8x128xf32>
    %310 = math.tanh %309 : vector<8x128xf32>
    %311 = vector.extract_strided_slice %292 {offsets = [0, 384], sizes = [8, 128], strides = [1, 1]} : vector<8x512xf32> to vector<8x128xf32>
    %cst_65 = arith.constant 5.000000e-01 : f32
    %312 = vector.broadcast %cst_65 : f32 to vector<8x128xf32>
    %313 = arith.mulf %312, %311 : vector<8x128xf32>
    %314 = math.tanh %313 : vector<8x128xf32>
    %cst_66 = arith.constant 5.000000e-01 : f32
    %315 = vector.broadcast %cst_66 : f32 to vector<8x128xf32>
    %316 = arith.mulf %315, %314 : vector<8x128xf32>
    %cst_67 = arith.constant 5.000000e-01 : f32
    %317 = vector.broadcast %cst_67 : f32 to vector<8x128xf32>
    %318 = arith.addf %316, %317 : vector<8x128xf32>
    %319 = arith.mulf %308, %268 : vector<8x128xf32>
    %320 = arith.mulf %300, %310 : vector<8x128xf32>
    %321 = arith.addf %319, %320 : vector<8x128xf32>
    %322 = math.tanh %321 : vector<8x128xf32>
    %323 = arith.mulf %318, %322 : vector<8x128xf32>
    %324 = vector.extract_strided_slice %0 {offsets = [0, 18], sizes = [8, 1], strides = [1, 1]} : vector<8x26xf32> to vector<8x1xf32>
    %325 = vector.extract_strided_slice %1 {offsets = [0, 0], sizes = [1, 512], strides = [1, 1]} : vector<3x512xf32> to vector<1x512xf32>
    %326 = vector.broadcast %324 : vector<8x1xf32> to vector<8x512xf32>
    %327 = vector.broadcast %325 : vector<1x512xf32> to vector<8x512xf32>
    %328 = arith.mulf %326, %327 : vector<8x512xf32>
    %329 = vector.extract_strided_slice %0 {offsets = [0, 19], sizes = [8, 1], strides = [1, 1]} : vector<8x26xf32> to vector<8x1xf32>
    %330 = vector.extract_strided_slice %1 {offsets = [1, 0], sizes = [1, 512], strides = [1, 1]} : vector<3x512xf32> to vector<1x512xf32>
    %331 = vector.broadcast %329 : vector<8x1xf32> to vector<8x512xf32>
    %332 = vector.broadcast %330 : vector<1x512xf32> to vector<8x512xf32>
    %333 = arith.mulf %331, %332 : vector<8x512xf32>
    %334 = arith.addf %328, %333 : vector<8x512xf32>
    %335 = vector.extract_strided_slice %0 {offsets = [0, 20], sizes = [8, 1], strides = [1, 1]} : vector<8x26xf32> to vector<8x1xf32>
    %336 = vector.extract_strided_slice %1 {offsets = [2, 0], sizes = [1, 512], strides = [1, 1]} : vector<3x512xf32> to vector<1x512xf32>
    %337 = vector.broadcast %335 : vector<8x1xf32> to vector<8x512xf32>
    %338 = vector.broadcast %336 : vector<1x512xf32> to vector<8x512xf32>
    %339 = arith.mulf %337, %338 : vector<8x512xf32>
    %340 = arith.addf %334, %339 : vector<8x512xf32>
    %341 = vector.broadcast %3 : vector<1x512xf32> to vector<8x512xf32>
    %342 = arith.addf %340, %341 : vector<8x512xf32>
    %343 = arith.truncf %323 : vector<8x128xf32> to vector<8x128xbf16>
    %cst_68 = arith.constant dense<0.000000e+00> : vector<8x512xf32>
    %344 = tpu.matmul %343, %2, %cst_68 {dimension_numbers = #tpu.dot_dimension_numbers<[1], [0], [0], [1], [0, 0, 1, 1], [], []>} : vector<8x128xbf16>, vector<128x512xbf16>, vector<8x512xf32> -> vector<8x512xf32>
    %345 = arith.addf %342, %344 : vector<8x512xf32>
    %346 = vector.extract_strided_slice %345 {offsets = [0, 0], sizes = [8, 128], strides = [1, 1]} : vector<8x512xf32> to vector<8x128xf32>
    %cst_69 = arith.constant 5.000000e-01 : f32
    %347 = vector.broadcast %cst_69 : f32 to vector<8x128xf32>
    %348 = arith.mulf %347, %346 : vector<8x128xf32>
    %349 = math.tanh %348 : vector<8x128xf32>
    %cst_70 = arith.constant 5.000000e-01 : f32
    %350 = vector.broadcast %cst_70 : f32 to vector<8x128xf32>
    %351 = arith.mulf %350, %349 : vector<8x128xf32>
    %cst_71 = arith.constant 5.000000e-01 : f32
    %352 = vector.broadcast %cst_71 : f32 to vector<8x128xf32>
    %353 = arith.addf %351, %352 : vector<8x128xf32>
    %354 = vector.extract_strided_slice %345 {offsets = [0, 128], sizes = [8, 128], strides = [1, 1]} : vector<8x512xf32> to vector<8x128xf32>
    %cst_72 = arith.constant 5.000000e-01 : f32
    %355 = vector.broadcast %cst_72 : f32 to vector<8x128xf32>
    %356 = arith.mulf %355, %354 : vector<8x128xf32>
    %357 = math.tanh %356 : vector<8x128xf32>
    %cst_73 = arith.constant 5.000000e-01 : f32
    %358 = vector.broadcast %cst_73 : f32 to vector<8x128xf32>
    %359 = arith.mulf %358, %357 : vector<8x128xf32>
    %cst_74 = arith.constant 5.000000e-01 : f32
    %360 = vector.broadcast %cst_74 : f32 to vector<8x128xf32>
    %361 = arith.addf %359, %360 : vector<8x128xf32>
    %362 = vector.extract_strided_slice %345 {offsets = [0, 256], sizes = [8, 128], strides = [1, 1]} : vector<8x512xf32> to vector<8x128xf32>
    %363 = math.tanh %362 : vector<8x128xf32>
    %364 = vector.extract_strided_slice %345 {offsets = [0, 384], sizes = [8, 128], strides = [1, 1]} : vector<8x512xf32> to vector<8x128xf32>
    %cst_75 = arith.constant 5.000000e-01 : f32
    %365 = vector.broadcast %cst_75 : f32 to vector<8x128xf32>
    %366 = arith.mulf %365, %364 : vector<8x128xf32>
    %367 = math.tanh %366 : vector<8x128xf32>
    %cst_76 = arith.constant 5.000000e-01 : f32
    %368 = vector.broadcast %cst_76 : f32 to vector<8x128xf32>
    %369 = arith.mulf %368, %367 : vector<8x128xf32>
    %cst_77 = arith.constant 5.000000e-01 : f32
    %370 = vector.broadcast %cst_77 : f32 to vector<8x128xf32>
    %371 = arith.addf %369, %370 : vector<8x128xf32>
    %372 = arith.mulf %361, %321 : vector<8x128xf32>
    %373 = arith.mulf %353, %363 : vector<8x128xf32>
    %374 = arith.addf %372, %373 : vector<8x128xf32>
    %375 = math.tanh %374 : vector<8x128xf32>
    %376 = arith.mulf %371, %375 : vector<8x128xf32>
    %377 = vector.extract_strided_slice %0 {offsets = [0, 21], sizes = [8, 1], strides = [1, 1]} : vector<8x26xf32> to vector<8x1xf32>
    %378 = vector.extract_strided_slice %1 {offsets = [0, 0], sizes = [1, 512], strides = [1, 1]} : vector<3x512xf32> to vector<1x512xf32>
    %379 = vector.broadcast %377 : vector<8x1xf32> to vector<8x512xf32>
    %380 = vector.broadcast %378 : vector<1x512xf32> to vector<8x512xf32>
    %381 = arith.mulf %379, %380 : vector<8x512xf32>
    %382 = vector.extract_strided_slice %0 {offsets = [0, 22], sizes = [8, 1], strides = [1, 1]} : vector<8x26xf32> to vector<8x1xf32>
    %383 = vector.extract_strided_slice %1 {offsets = [1, 0], sizes = [1, 512], strides = [1, 1]} : vector<3x512xf32> to vector<1x512xf32>
    %384 = vector.broadcast %382 : vector<8x1xf32> to vector<8x512xf32>
    %385 = vector.broadcast %383 : vector<1x512xf32> to vector<8x512xf32>
    %386 = arith.mulf %384, %385 : vector<8x512xf32>
    %387 = arith.addf %381, %386 : vector<8x512xf32>
    %388 = vector.extract_strided_slice %0 {offsets = [0, 23], sizes = [8, 1], strides = [1, 1]} : vector<8x26xf32> to vector<8x1xf32>
    %389 = vector.extract_strided_slice %1 {offsets = [2, 0], sizes = [1, 512], strides = [1, 1]} : vector<3x512xf32> to vector<1x512xf32>
    %390 = vector.broadcast %388 : vector<8x1xf32> to vector<8x512xf32>
    %391 = vector.broadcast %389 : vector<1x512xf32> to vector<8x512xf32>
    %392 = arith.mulf %390, %391 : vector<8x512xf32>
    %393 = arith.addf %387, %392 : vector<8x512xf32>
    %394 = vector.broadcast %3 : vector<1x512xf32> to vector<8x512xf32>
    %395 = arith.addf %393, %394 : vector<8x512xf32>
    %396 = arith.truncf %376 : vector<8x128xf32> to vector<8x128xbf16>
    %cst_78 = arith.constant dense<0.000000e+00> : vector<8x512xf32>
    %397 = tpu.matmul %396, %2, %cst_78 {dimension_numbers = #tpu.dot_dimension_numbers<[1], [0], [0], [1], [0, 0, 1, 1], [], []>} : vector<8x128xbf16>, vector<128x512xbf16>, vector<8x512xf32> -> vector<8x512xf32>
    %398 = arith.addf %395, %397 : vector<8x512xf32>
    %399 = vector.extract_strided_slice %398 {offsets = [0, 0], sizes = [8, 128], strides = [1, 1]} : vector<8x512xf32> to vector<8x128xf32>
    %cst_79 = arith.constant 5.000000e-01 : f32
    %400 = vector.broadcast %cst_79 : f32 to vector<8x128xf32>
    %401 = arith.mulf %400, %399 : vector<8x128xf32>
    %402 = math.tanh %401 : vector<8x128xf32>
    %cst_80 = arith.constant 5.000000e-01 : f32
    %403 = vector.broadcast %cst_80 : f32 to vector<8x128xf32>
    %404 = arith.mulf %403, %402 : vector<8x128xf32>
    %cst_81 = arith.constant 5.000000e-01 : f32
    %405 = vector.broadcast %cst_81 : f32 to vector<8x128xf32>
    %406 = arith.addf %404, %405 : vector<8x128xf32>
    %407 = vector.extract_strided_slice %398 {offsets = [0, 128], sizes = [8, 128], strides = [1, 1]} : vector<8x512xf32> to vector<8x128xf32>
    %cst_82 = arith.constant 5.000000e-01 : f32
    %408 = vector.broadcast %cst_82 : f32 to vector<8x128xf32>
    %409 = arith.mulf %408, %407 : vector<8x128xf32>
    %410 = math.tanh %409 : vector<8x128xf32>
    %cst_83 = arith.constant 5.000000e-01 : f32
    %411 = vector.broadcast %cst_83 : f32 to vector<8x128xf32>
    %412 = arith.mulf %411, %410 : vector<8x128xf32>
    %cst_84 = arith.constant 5.000000e-01 : f32
    %413 = vector.broadcast %cst_84 : f32 to vector<8x128xf32>
    %414 = arith.addf %412, %413 : vector<8x128xf32>
    %415 = vector.extract_strided_slice %398 {offsets = [0, 256], sizes = [8, 128], strides = [1, 1]} : vector<8x512xf32> to vector<8x128xf32>
    %416 = math.tanh %415 : vector<8x128xf32>
    %417 = vector.extract_strided_slice %398 {offsets = [0, 384], sizes = [8, 128], strides = [1, 1]} : vector<8x512xf32> to vector<8x128xf32>
    %cst_85 = arith.constant 5.000000e-01 : f32
    %418 = vector.broadcast %cst_85 : f32 to vector<8x128xf32>
    %419 = arith.mulf %418, %417 : vector<8x128xf32>
    %420 = math.tanh %419 : vector<8x128xf32>
    %cst_86 = arith.constant 5.000000e-01 : f32
    %421 = vector.broadcast %cst_86 : f32 to vector<8x128xf32>
    %422 = arith.mulf %421, %420 : vector<8x128xf32>
    %cst_87 = arith.constant 5.000000e-01 : f32
    %423 = vector.broadcast %cst_87 : f32 to vector<8x128xf32>
    %424 = arith.addf %422, %423 : vector<8x128xf32>
    %425 = arith.mulf %414, %374 : vector<8x128xf32>
    %426 = arith.mulf %406, %416 : vector<8x128xf32>
    %427 = arith.addf %425, %426 : vector<8x128xf32>
    %428 = math.tanh %427 : vector<8x128xf32>
    %429 = arith.mulf %424, %428 : vector<8x128xf32>
    %c0_88 = arith.constant 0 : index
    %c0_89 = arith.constant 0 : index
    %430 = vector.load %arg5[%c0_88, %c0_89] : memref<2x64xf32, #tpu.memory_space<vmem>>, vector<2x64xf32>
    %431 = vector.extract_strided_slice %0 {offsets = [0, 24], sizes = [8, 1], strides = [1, 1]} : vector<8x26xf32> to vector<8x1xf32>
    %432 = vector.extract_strided_slice %430 {offsets = [0, 0], sizes = [1, 64], strides = [1, 1]} : vector<2x64xf32> to vector<1x64xf32>
    %433 = vector.broadcast %431 : vector<8x1xf32> to vector<8x64xf32>
    %434 = vector.broadcast %432 : vector<1x64xf32> to vector<8x64xf32>
    %435 = arith.mulf %433, %434 : vector<8x64xf32>
    %436 = vector.extract_strided_slice %0 {offsets = [0, 25], sizes = [8, 1], strides = [1, 1]} : vector<8x26xf32> to vector<8x1xf32>
    %437 = vector.extract_strided_slice %430 {offsets = [1, 0], sizes = [1, 64], strides = [1, 1]} : vector<2x64xf32> to vector<1x64xf32>
    %438 = vector.broadcast %436 : vector<8x1xf32> to vector<8x64xf32>
    %439 = vector.broadcast %437 : vector<1x64xf32> to vector<8x64xf32>
    %440 = arith.mulf %438, %439 : vector<8x64xf32>
    %441 = arith.addf %435, %440 : vector<8x64xf32>
    %c0_90 = arith.constant 0 : index
    %c0_91 = arith.constant 0 : index
    %442 = vector.load %arg6[%c0_90, %c0_91] : memref<1x64xf32, #tpu.memory_space<vmem>>, vector<1x64xf32>
    %443 = vector.broadcast %442 : vector<1x64xf32> to vector<8x64xf32>
    %444 = arith.addf %441, %443 : vector<8x64xf32>
    %cst_92 = arith.constant 0.000000e+00 : f32
    %445 = vector.broadcast %cst_92 : f32 to vector<8x64xf32>
    %446 = arith.cmpf ogt, %444, %445 : vector<8x64xf32>
    %cst_93 = arith.constant 0.00999999977 : f32
    %447 = vector.broadcast %cst_93 : f32 to vector<8x64xf32>
    %448 = arith.mulf %447, %444 : vector<8x64xf32>
    %449 = arith.select %446, %444, %448 : vector<8x64xi1>, vector<8x64xf32>
    %c0_94 = arith.constant 0 : index
    %c0_95 = arith.constant 0 : index
    %450 = vector.load %arg7[%c0_94, %c0_95] : memref<128x32xf32, #tpu.memory_space<vmem>>, vector<128x32xf32>
    %cst_96 = arith.constant dense<0.000000e+00> : vector<8x32xf32>
    %451 = tpu.matmul %429, %450, %cst_96 {dimension_numbers = #tpu.dot_dimension_numbers<[1], [0], [0], [1], [0, 0, 1, 1], [], []>} : vector<8x128xf32>, vector<128x32xf32>, vector<8x32xf32> -> vector<8x32xf32>
    %c0_97 = arith.constant 0 : index
    %c0_98 = arith.constant 0 : index
    %452 = vector.load %arg8[%c0_97, %c0_98] : memref<64x32xf32, #tpu.memory_space<vmem>>, vector<64x32xf32>
    %cst_99 = arith.constant dense<0.000000e+00> : vector<8x32xf32>
    %453 = tpu.matmul %449, %452, %cst_99 {dimension_numbers = #tpu.dot_dimension_numbers<[1], [0], [0], [1], [0, 0, 1, 1], [], []>} : vector<8x64xf32>, vector<64x32xf32>, vector<8x32xf32> -> vector<8x32xf32>
    %454 = arith.addf %451, %453 : vector<8x32xf32>
    %c0_100 = arith.constant 0 : index
    %c0_101 = arith.constant 0 : index
    %455 = vector.load %arg9[%c0_100, %c0_101] : memref<1x32xf32, #tpu.memory_space<vmem>>, vector<1x32xf32>
    %456 = vector.broadcast %455 : vector<1x32xf32> to vector<8x32xf32>
    %457 = arith.addf %454, %456 : vector<8x32xf32>
    %cst_102 = arith.constant 0.000000e+00 : f32
    %458 = vector.broadcast %cst_102 : f32 to vector<8x32xf32>
    %459 = arith.cmpf ogt, %457, %458 : vector<8x32xf32>
    %cst_103 = arith.constant 0.00999999977 : f32
    %460 = vector.broadcast %cst_103 : f32 to vector<8x32xf32>
    %461 = arith.mulf %460, %457 : vector<8x32xf32>
    %462 = arith.select %459, %457, %461 : vector<8x32xi1>, vector<8x32xf32>
    %c0_104 = arith.constant 0 : index
    %c0_105 = arith.constant 0 : index
    %463 = vector.load %arg10[%c0_104, %c0_105] : memref<32x16xf32, #tpu.memory_space<vmem>>, vector<32x16xf32>
    %cst_106 = arith.constant dense<0.000000e+00> : vector<8x16xf32>
    %464 = tpu.matmul %462, %463, %cst_106 {dimension_numbers = #tpu.dot_dimension_numbers<[1], [0], [0], [1], [0, 0, 1, 1], [], []>} : vector<8x32xf32>, vector<32x16xf32>, vector<8x16xf32> -> vector<8x16xf32>
    %c0_107 = arith.constant 0 : index
    %c0_108 = arith.constant 0 : index
    %465 = vector.load %arg11[%c0_107, %c0_108] : memref<1x16xf32, #tpu.memory_space<vmem>>, vector<1x16xf32>
    %466 = vector.broadcast %465 : vector<1x16xf32> to vector<8x16xf32>
    %467 = arith.addf %464, %466 : vector<8x16xf32>
    %cst_109 = arith.constant 0.000000e+00 : f32
    %468 = vector.broadcast %cst_109 : f32 to vector<8x16xf32>
    %469 = arith.cmpf ogt, %467, %468 : vector<8x16xf32>
    %cst_110 = arith.constant 0.00999999977 : f32
    %470 = vector.broadcast %cst_110 : f32 to vector<8x16xf32>
    %471 = arith.mulf %470, %467 : vector<8x16xf32>
    %472 = arith.select %469, %467, %471 : vector<8x16xi1>, vector<8x16xf32>
    %c0_111 = arith.constant 0 : index
    %c0_112 = arith.constant 0 : index
    %473 = vector.load %arg12[%c0_111, %c0_112] : memref<16x1xf32, #tpu.memory_space<vmem>>, vector<16x1xf32>
    %cst_113 = arith.constant dense<0.000000e+00> : vector<8x1xf32>
    %474 = tpu.matmul %472, %473, %cst_113 {dimension_numbers = #tpu.dot_dimension_numbers<[1], [0], [0], [1], [0, 0, 1, 1], [], []>} : vector<8x16xf32>, vector<16x1xf32>, vector<8x1xf32> -> vector<8x1xf32>
    %c0_114 = arith.constant 0 : index
    %c0_115 = arith.constant 0 : index
    %475 = vector.load %arg13[%c0_114, %c0_115] : memref<1x1xf32, #tpu.memory_space<vmem>>, vector<1x1xf32>
    %476 = vector.broadcast %475 : vector<1x1xf32> to vector<8x1xf32>
    %477 = arith.addf %474, %476 : vector<8x1xf32>
    %c0_116 = arith.constant 0 : index
    %c0_117 = arith.constant 0 : index
    %478 = vector.load %arg14[%c0_116, %c0_117] : memref<8x1xf32, #tpu.memory_space<vmem>>, vector<8x1xf32>
    tpu.vector_store %arg14[%c0_116, %c0_117], %477 {strides = array<i32>} : memref<8x1xf32, #tpu.memory_space<vmem>>, vector<8x1xf32>,
    return
  }
  func.func @transform_0(%arg0: i32) -> (i32, i32) {
    %c0_i32 = arith.constant 0 : i32
    %c0_i32_0 = arith.constant 0 : i32
    return %arg0, %c0_i32 : i32, i32
  }
  func.func @transform_1(%arg0: i32) -> (i32, i32) {
    %c0_i32 = arith.constant 0 : i32
    %c0_i32_0 = arith.constant 0 : i32
    %c0_i32_1 = arith.constant 0 : i32
    return %c0_i32, %c0_i32_0 : i32, i32
  }
  func.func @transform_2(%arg0: i32) -> (i32, i32) {
    %c0_i32 = arith.constant 0 : i32
    %c0_i32_0 = arith.constant 0 : i32
    %c0_i32_1 = arith.constant 0 : i32
    return %c0_i32, %c0_i32_0 : i32, i32
  }
  func.func @transform_3(%arg0: i32) -> (i32, i32) {
    %c0_i32 = arith.constant 0 : i32
    %c0_i32_0 = arith.constant 0 : i32
    %c0_i32_1 = arith.constant 0 : i32
    return %c0_i32, %c0_i32_0 : i32, i32
  }
  func.func @transform_4(%arg0: i32) -> (i32, i32) {
    %c0_i32 = arith.constant 0 : i32
    %c0_i32_0 = arith.constant 0 : i32
    %c0_i32_1 = arith.constant 0 : i32
    return %c0_i32, %c0_i32_0 : i32, i32
  }
  func.func @transform_5(%arg0: i32) -> (i32, i32) {
    %c0_i32 = arith.constant 0 : i32
    %c0_i32_0 = arith.constant 0 : i32
    %c0_i32_1 = arith.constant 0 : i32
    return %c0_i32, %c0_i32_0 : i32, i32
  }
  func.func @transform_6(%arg0: i32) -> (i32, i32) {
    %c0_i32 = arith.constant 0 : i32
    %c0_i32_0 = arith.constant 0 : i32
    %c0_i32_1 = arith.constant 0 : i32
    return %c0_i32, %c0_i32_0 : i32, i32
  }
  func.func @transform_7(%arg0: i32) -> (i32, i32) {
    %c0_i32 = arith.constant 0 : i32
    %c0_i32_0 = arith.constant 0 : i32
    %c0_i32_1 = arith.constant 0 : i32
    return %c0_i32, %c0_i32_0 : i32, i32
  }
  func.func @transform_8(%arg0: i32) -> (i32, i32) {
    %c0_i32 = arith.constant 0 : i32
    %c0_i32_0 = arith.constant 0 : i32
    %c0_i32_1 = arith.constant 0 : i32
    return %c0_i32, %c0_i32_0 : i32, i32
  }
  func.func @transform_9(%arg0: i32) -> (i32, i32) {
    %c0_i32 = arith.constant 0 : i32
    %c0_i32_0 = arith.constant 0 : i32
    %c0_i32_1 = arith.constant 0 : i32
    return %c0_i32, %c0_i32_0 : i32, i32
  }
  func.func @transform_10(%arg0: i32) -> (i32, i32) {
    %c0_i32 = arith.constant 0 : i32
    %c0_i32_0 = arith.constant 0 : i32
    %c0_i32_1 = arith.constant 0 : i32
    return %c0_i32, %c0_i32_0 : i32, i32
  }
  func.func @transform_11(%arg0: i32) -> (i32, i32) {
    %c0_i32 = arith.constant 0 : i32
    %c0_i32_0 = arith.constant 0 : i32
    %c0_i32_1 = arith.constant 0 : i32
    return %c0_i32, %c0_i32_0 : i32, i32
  }
  func.func @transform_12(%arg0: i32) -> (i32, i32) {
    %c0_i32 = arith.constant 0 : i32
    %c0_i32_0 = arith.constant 0 : i32
    %c0_i32_1 = arith.constant 0 : i32
    return %c0_i32, %c0_i32_0 : i32, i32
  }
  func.func @transform_13(%arg0: i32) -> (i32, i32) {
    %c0_i32 = arith.constant 0 : i32
    %c0_i32_0 = arith.constant 0 : i32
    return %arg0, %c0_i32 : i32, i32
  }
}

</mosaic_0001>

<bundles_post_ra>
// kernel: tpu_custom_call.1
= control target key start
LH: loop header
LB: loop body
LE: loop exit
PB: predicated region body
PF: predicated region fallthrough
CT: control target
= control target key end

     0   :  { %s2462_s0 = inlined_call_operand.vmem [shape: f32[8,26], index: 0, kind: input, shape index: {}]   ;;  %s2463_s1 = inlined_call_operand.vmem [shape: f32[3,512], index: 1, kind: input, shape index: {}]   ;;  %s2464_s2 = inlined_call_operand.hbm [shape: bf16[128,512], index: 2, kind: input, shape index: {}]   ;;  %s2465_s3 = inlined_call_operand.vmem [shape: f32[1,512], index: 3, kind: input, shape index: {}]   ;;  %s2466_s4 = inlined_call_operand.vmem [shape: f32[2,64], index: 4, kind: input, shape index: {}]   ;;  %s2467_s5 = inlined_call_operand.vmem [shape: f32[1,64], index: 5, kind: input, shape index: {}]   ;;  %s2468_s6 = inlined_call_operand.vmem [shape: f32[128,32], index: 6, kind: input, shape index: {}]   ;;  %s2469_s7 = inlined_call_operand.vmem [shape: f32[64,32], index: 7, kind: input, shape index: {}]   ;;  %s2470_s8 = inlined_call_operand.vmem [shape: f32[1,32], index: 8, kind: input, shape index: {}]   ;;  %s2471_s9 = inlined_call_operand.vmem [shape: f32[32,16], index: 9, kind: input, shape index: {}]   ;;  %s2472_s10 = inlined_call_operand.vmem [shape: f32[1,16], index: 10, kind: input, shape index: {}]   ;;  %s2473_s11 = inlined_call_operand.vmem [shape: f32[16,1], index: 11, kind: input, shape index: {}]   ;;  %s2474_s12 = inlined_call_operand.<no memory space> [shape: f32[1,1], index: 12, kind: input, shape index: {}]   ;;  %s2475_s13 = inlined_call_operand.vmem [shape: f32[8,1], index: 13, kind: output, shape index: {}]  }
   0x1   :  { %v18_v0 = vstv %s2474_s12 }
   0x2   :  { %19 = vst [vmem:[#allocation2] sm:$0x1] %v18_v0 }
   0x3   :  { %20 = vsyncpa [#allocation4], 0  ;;  %s29_s29 = sshll.u32 %s2464_s2, 4  ;;  %s1694_s30 = smov [#allocation3]   ;;  %s30_s29 = int_to_ptr.hbm [resolvable:$true] %s29_s29 }
   0x4   :  { %s31_s14 = sshll.u32 %s1694_s30, 4  ;;  %s1695_s15 = smov 256   ;;  %s32_s14 = int_to_ptr.vmem [resolvable:$true] %s31_s14 }
   0x5   :  { %s1696_s16 = smov 16  }
   0x6   :  { %37 = dma.hbm_to_vmem [thread:$0]  %s30_s29, 4096, %s32_s14, [#allocation4], %s1695_s15, %s1695_s15, %s1696_s16  }
   0x7   :  { %1692 = dma.done.wait [#allocation4], 4096  }
   0x8   :  { %1693 = vsyncadd [#allocation4], 4294963200  ;;  %v1697_v1 = vmov 0   ;;  %v1698_v2 = vmov 2   ;;  %v1478_v3 = vld [vmem:[#allocation3 + $0xe0] sm:$0xf] }
   0x9   :  { %1556 = vset.pattern.permute.xlu0 %v1697_v1  ;;  %1558 = vset.pattern.permute.xlu1 %v1698_v2  ;;  %v1525_v4 = vld [vmem:[#allocation3 + $0xec] sm:$0xf0]  ;;  %v1523_v5 = vld [vmem:[#allocation3 + $0xe4] sm:$0xf]  ;;  %v1480_v7 = vld [vmem:[#allocation3 + $0xf0] sm:$0xf0] }
   0xa   :  { %v1800_v6 = vor.u32 %v1525_v4, %v1478_v3  ;;  %v1486_v8 = vld [vmem:[#allocation3 + $0xe8] sm:$0xf]  ;;  %v1526_v9 = vld [vmem:[#allocation3 + $0xf4] sm:$0xf0]  ;;  %v1802_v10 = vor.u32 %v1523_v5, %v1480_v7  ;;  %v1524_v12 = vld [vmem:[#allocation3 + $0xec] sm:$0xf] }
   0xb   :  { %v1804_v11 = vor.u32 %v1526_v9, %v1486_v8  ;;  %v1488_v13 = vld [vmem:[#allocation3 + $0xf8] sm:$0xf0]  ;;  %v1462_v14 = vld [vmem:[#allocation3 + $0xc0] sm:$0xf]  ;;  %v1521_v16 = vld [vmem:[#allocation3 + $0xcc] sm:$0xf0] }
   0xc   :  { %343 = vmatpush.bf16.msra.mxu0 %v1800_v6  ;;  %v1807_v15 = vor.u32 %v1524_v12, %v1488_v13  ;;  %v1519_v17 = vld [vmem:[#allocation3 + $0xc4] sm:$0xf]  ;;  %v1464_v18 = vld [vmem:[#allocation3 + $0xd0] sm:$0xf0]  ;;  %356 = vmatpush.bf16.msra.mxu1 %v1802_v10  ;;  %v1811_v19 = vor.u32 %v1521_v16, %v1462_v14  ;;  %v1470_v21 = vld [vmem:[#allocation3 + $0xc8] sm:$0xf] }
   0xd   :  { %369 = vmatpush.bf16.msra.mxu2 %v1804_v11  ;;  %v1813_v20 = vor.u32 %v1519_v17, %v1464_v18  ;;  %v1522_v22 = vld [vmem:[#allocation3 + $0xd4] sm:$0xf0]  ;;  %v1520_v23 = vld [vmem:[#allocation3 + $0xcc] sm:$0xf]  ;;  %v1472_v25 = vld [vmem:[#allocation3 + $0xd8] sm:$0xf0] }
   0xe   :  { %382 = vmatpush.bf16.msra.mxu3 %v1807_v15  ;;  %v1816_v24 = vor.u32 %v1522_v22, %v1470_v21  ;;  %v1446_v26 = vld [vmem:[#allocation3 + $0xa0] sm:$0xf]  ;;  %v1517_v27 = vld [vmem:[#allocation3 + $0xac] sm:$0xf0]  ;;  %v1818_v28 = vor.u32 %v1520_v23, %v1472_v25  ;;  %v1515_v29 = vld [vmem:[#allocation3 + $0xa4] sm:$0xf] }
   0xf   :  { %v1448_v30 = vld [vmem:[#allocation3 + $0xb0] sm:$0xf0]  ;;  %v1454_v31 = vld [vmem:[#allocation3 + $0xa8] sm:$0xf]  ;;  %v1821_v32 = vor.u32 %v1517_v27, %v1446_v26  ;;  %v1518_v33 = vld [vmem:[#allocation3 + $0xb4] sm:$0xf0] }
  0x10   :  { %344 = vmatpush.bf16.msra.mxu0 %v1811_v19  ;;  %v1516_v34 = vld [vmem:[#allocation3 + $0xac] sm:$0xf]  ;;  %v1456_v35 = vld [vmem:[#allocation3 + $0xb8] sm:$0xf0]  ;;  %357 = vmatpush.bf16.msra.mxu1 %v1813_v20  ;;  %v1825_v36 = vor.u32 %v1515_v29, %v1448_v30  ;;  %v1827_v37 = vor.u32 %v1518_v33, %v1454_v31  ;;  %v1430_v38 = vld [vmem:[#allocation3 + $0x80] sm:$0xf] }
  0x11   :  { %370 = vmatpush.bf16.msra.mxu2 %v1816_v24  ;;  %v1513_v39 = vld [vmem:[#allocation3 + $0x8c] sm:$0xf0]  ;;  %v1511_v40 = vld [vmem:[#allocation3 + $0x84] sm:$0xf]  ;;  %v1830_v41 = vor.u32 %v1516_v34, %v1456_v35  ;;  %v1432_v42 = vld [vmem:[#allocation3 + $0x90] sm:$0xf0] }
  0x12   :  { %383 = vmatpush.bf16.msra.mxu3 %v1818_v28  ;;  %v1438_v43 = vld [vmem:[#allocation3 + $0x88] sm:$0xf]  ;;  %v1514_v44 = vld [vmem:[#allocation3 + $0x94] sm:$0xf0]  ;;  %v1512_v45 = vld [vmem:[#allocation3 + $0x8c] sm:$0xf]  ;;  %v1833_v47 = vor.u32 %v1513_v39, %v1430_v38  ;;  %v1837_v49 = vor.u32 %v1511_v40, %v1432_v42 }
  0x13   :  { %v1440_v46 = vld [vmem:[#allocation3 + $0x98] sm:$0xf0]  ;;  %v1414_v48 = vld [vmem:[#allocation3 + $0x60] sm:$0xf]  ;;  %v1839_v50 = vor.u32 %v1514_v44, %v1438_v43  ;;  %v1509_v51 = vld [vmem:[#allocation3 + $0x6c] sm:$0xf0] }
  0x14   :  { %345 = vmatpush.bf16.msra.mxu0 %v1821_v32  ;;  %358 = vmatpush.bf16.msra.mxu1 %v1825_v36  ;;  %v1507_v52 = vld [vmem:[#allocation3 + $0x64] sm:$0xf]  ;;  %v1416_v53 = vld [vmem:[#allocation3 + $0x70] sm:$0xf0]  ;;  %v1842_v54 = vor.u32 %v1512_v45, %v1440_v46  ;;  %v1422_v55 = vld [vmem:[#allocation3 + $0x68] sm:$0xf]  ;;  %v1852_v60 = vor.u32 %v1509_v51, %v1414_v48 }
  0x15   :  { %371 = vmatpush.bf16.msra.mxu2 %v1827_v37  ;;  %v1510_v56 = vld [vmem:[#allocation3 + $0x74] sm:$0xf0]  ;;  %v1847_v57 = vld [vmem:[%s2462_s0] sm:$0xff]  ;;  %v1508_v58 = vld [vmem:[#allocation3 + $0x6c] sm:$0xf]  ;;  %v1856_v61 = vor.u32 %v1507_v52, %v1416_v53  ;;  %v1699_v29 = vmov 1  }
  0x16   :  { %384 = vmatpush.bf16.msra.mxu3 %v1830_v41  ;;  %v1424_v59 = vld [vmem:[#allocation3 + $0x78] sm:$0xf0]  ;;  %101 = vperm.xlu0 %1556, %v1847_v57   ;;  %v1858_v62 = vor.u32 %v1510_v56, %v1422_v55  ;;  %v1398_v63 = vld [vmem:[#allocation3 + $0x40] sm:$0xf]  ;;  %v1505_v0 = vld [vmem:[#allocation3 + $0x4c] sm:$0xf0] }
  0x17   :  { %147 = vperm.xlu1 %1558, %v1847_v57   ;;  %v1503_v2 = vld [vmem:[#allocation3 + $0x44] sm:$0xf]  ;;  %v1861_v3 = vor.u32 %v1508_v58, %v1424_v59  ;;  %v1400_v4 = vld [vmem:[#allocation3 + $0x50] sm:$0xf0]  ;;  %v1406_v5 = vld [vmem:[#allocation3 + $0x48] sm:$0xf]  ;;  %v1864_v12 = vor.u32 %v1505_v0, %v1398_v63 }
  0x18   :  { %346 = vmatpush.bf16.msra.mxu0 %v1833_v47  ;;  %359 = vmatpush.bf16.msra.mxu1 %v1837_v49  ;;  %v1506_v7 = vld [vmem:[#allocation3 + $0x54] sm:$0xf0]  ;;  %v1504_v8 = vld [vmem:[#allocation3 + $0x4c] sm:$0xf]  ;;  %v1408_v9 = vld [vmem:[#allocation3 + $0x58] sm:$0xf0]  ;;  %v1868_v13 = vor.u32 %v1503_v2, %v1400_v4 }
  0x19   :  { %372 = vmatpush.bf16.msra.mxu2 %v1839_v50  ;;  %v1870_v14 = vor.u32 %v1506_v7, %v1406_v5  ;;  %v1382_v16 = vld [vmem:[#allocation3 + $0x20] sm:$0xf]  ;;  %v1501_v17 = vld [vmem:[#allocation3 + $0x2c] sm:$0xf0]  ;;  %v1499_v18 = vld [vmem:[#allocation3 + $0x24] sm:$0xf]  ;;  %v1873_v21 = vor.u32 %v1504_v8, %v1408_v9 }
  0x1a   :  { %385 = vmatpush.bf16.msra.mxu3 %v1842_v54  ;;  %v1384_v22 = vld [vmem:[#allocation3 + $0x30] sm:$0xf0]  ;;  %v1390_v23 = vld [vmem:[#allocation3 + $0x28] sm:$0xf]  ;;  %v1502_v25 = vld [vmem:[#allocation3 + $0x34] sm:$0xf0]  ;;  %v1876_v30 = vor.u32 %v1501_v17, %v1382_v16 }
  0x1b   :  { %v1500_v26 = vld [vmem:[#allocation3 + $0x2c] sm:$0xf]  ;;  %v1392_v27 = vld [vmem:[#allocation3 + $0x38] sm:$0xf0]  ;;  %v1366_v31 = vld [vmem:[#allocation3] sm:$0xf]  ;;  %v1881_v33 = vor.u32 %v1499_v18, %v1384_v22  ;;  %v1883_v34 = vor.u32 %v1502_v25, %v1390_v23 }
  0x1c   :  { %347 = vmatpush.bf16.msra.mxu0 %v1852_v60  ;;  %360 = vmatpush.bf16.msra.mxu1 %v1856_v61  ;;  %v1497_v35 = vld [vmem:[#allocation3 + $0xc] sm:$0xf0]  ;;  %v1495_v38 = vld [vmem:[#allocation3 + $0x4] sm:$0xf]  ;;  %v1886_v39 = vor.u32 %v1500_v26, %v1392_v27  ;;  %v1368_v40 = vld [vmem:[#allocation3 + $0x10] sm:$0xf0] }
  0x1d   :  { %373 = vmatpush.bf16.msra.mxu2 %v1858_v62  ;;  %v1374_v42 = vld [vmem:[#allocation3 + $0x8] sm:$0xf]  ;;  %v1498_v43 = vld [vmem:[#allocation3 + $0x14] sm:$0xf0]  ;;  %v1496_v44 = vld [vmem:[#allocation3 + $0xc] sm:$0xf]  ;;  %v1889_v46 = vor.u32 %v1497_v35, %v1366_v31  ;;  %v1893_v48 = vor.u32 %v1495_v38, %v1368_v40 }
  0x1e   :  { %386 = vmatpush.bf16.msra.mxu3 %v1861_v3  ;;  %1557 = vset.pattern.permute.xlu0 %v1699_v29  ;;  %v1376_v45 = vld [vmem:[#allocation3 + $0x18] sm:$0xf0]  ;;  %v1895_v51 = vor.u32 %v1498_v43, %v1374_v42  ;;  %v65_v63 = vld [vmem:[%s2463_s1 + $0x8] sm:$0x77]  ;;  %vm1240_vm1 = vcmask 523264   ;;  %vm1300_vm3 = vcmask 261120  }
  0x1f   :  { %123 = vperm.xlu0 %1557, %v1847_v57   ;;  %v1898_v52 = vor.u32 %v1496_v44, %v1376_v45  ;;  %v64_v53 = vld [vmem:[%s2463_s1] sm:$0x77]  ;;  %v108_v16 = vperm.slane %v65_v63, 0  ;;  %v109_v17 = vperm.slane %v65_v63, 4  ;;  %v128_v18 = vperm.slane %v65_v63, 1 }
  0x20   :  { %348 = vmatpush.bf16.msra.mxu0 %v1864_v12  ;;  %361 = vmatpush.bf16.msra.mxu1 %v1868_v13  ;;  %2507 = vst [vmem:[#allocation6_spill] sm:$0xff] %v1895_v51  ;;  %v106_v55 = vperm.slane %v64_v53, 0  ;;  %v126_v56 = vperm.slane %v64_v53, 1  ;;  %v107_v58 = vperm.slane %v64_v53, 4  ;;  %v127_v59 = vperm.slane %v64_v53, 5 }
  0x21   :  { %374 = vmatpush.bf16.msra.mxu2 %v1870_v14  ;;  %2508 = vst [vmem:[#allocation7_spill] sm:$0xff] %v1898_v52  ;;  %v150_v4 = vperm.slane %v64_v53, 2  ;;  %v151_v9 = vperm.slane %v64_v53, 6  ;;  %v129_v23 = vperm.slane %v65_v63, 5  ;;  %v152_v38 = vperm.slane %v65_v63, 2 }
  0x22   :  { %387 = vmatpush.bf16.msra.mxu3 %v1873_v21  ;;  %v1978_v0 = vperm.slane %v106_v55, 0  ;;  %v1980_v2 = vperm.slane %v126_v56, 1  ;;  %v1982_v5 = vperm.slane %v107_v58, 0  ;;  %v1984_v7 = vperm.slane %v127_v59, 1  ;;  %v98_v55 = vld [vmem:[%s2465_s3] sm:$0xf] }
  0x23   :  { %v1988_v26 = vperm.slane %v150_v4, 2  ;;  %v1992_v31 = vperm.slane %v151_v9, 2  ;;  %v1994_v40 = vperm.slane %v108_v16, 0  ;;  %v1996_v42 = vperm.slane %v128_v18, 1 }
  0x24   :  { %349 = vmatpush.bf16.msra.mxu0 %v1876_v30  ;;  %362 = vmatpush.bf16.msra.mxu1 %v1881_v33  ;;  %2509 = vst [vmem:[#allocation8_spill] sm:$0xff] %v1978_v0  ;;  %v153_v43 = vperm.slane %v65_v63, 6  ;;  %v1998_v44 = vperm.slane %v109_v17, 0  ;;  %v2000_v45 = vperm.slane %v129_v23, 1  ;;  %v2007_v4 = vperm.slane %v152_v38, 2 }
  0x25   :  { %375 = vmatpush.bf16.msra.mxu2 %v1883_v34  ;;  %2510 = vst [vmem:[#allocation9_spill] sm:$0xff] %v1980_v2  ;;  %v2013_v17 = vperm.slane %v98_v55, 0  ;;  %vm1333_vm5 = vcmask 130048   ;;  %vm1357_vm6 = vcmask 7168  }
  0x26   :  { %388 = vmatpush.bf16.msra.mxu3 %v1886_v39  ;;  %2511 = vst [vmem:[#allocation10_spill] sm:$0xff] %v1982_v5  ;;  %v2011_v16 = vperm.slane %v153_v43, 2 }
  0x27   :  { %2512 = vst [vmem:[#allocation11_spill] sm:$0xff] %v1984_v7 }
  0x28   :  { %350 = vmatpush.bf16.msra.mxu0 %v1889_v46  ;;  %363 = vmatpush.bf16.msra.mxu1 %v1893_v48  ;;  %2513 = vst [vmem:[#allocation12_spill] sm:$0xff] %v1988_v26 }
  0x29   :  { %376 = vmatpush.bf16.msra.mxu2 %v1895_v51  ;;  %2514 = vst [vmem:[#allocation13_spill] sm:$0xff] %v1992_v31 }
  0x2a   :  { %389 = vmatpush.bf16.msra.mxu3 %v1898_v52  ;;  %2515 = vst [vmem:[#allocation14_spill] sm:$0xff] %v1994_v40 }
  0x2b   :  { %351 = vmatmul.bf16.vlgmr.msra.gmra.mxu0 %v1697_v1  ;;  %364 = vmatmul.bf16.vlgmr.msra.gmra.mxu1 %v1697_v1  ;;  %2516 = vst [vmem:[#allocation15_spill] sm:$0xff] %v1996_v42 }
  0x2c   :  { %454 = vmatpush.bf16.msrb.mxu0 %v1800_v6  ;;  %467 = vmatpush.bf16.msrb.mxu1 %v1802_v10  ;;  %2517 = vst [vmem:[#allocation16_spill] sm:$0xff] %v1998_v44 }
  0x2d   :  { %377 = vmatmul.bf16.vlgmr.msra.gmra.mxu2 %v1697_v1  ;;  %390 = vmatmul.bf16.vlgmr.msra.gmra.mxu3 %v1697_v1  ;;  %2518 = vst [vmem:[#allocation17_spill] sm:$0xff] %v2000_v45 }
  0x2e   :  { %480 = vmatpush.bf16.msrb.mxu2 %v1804_v11  ;;  %493 = vmatpush.bf16.msrb.mxu3 %v1807_v15  ;;  %2519 = vst [vmem:[#allocation18_spill] sm:$0xff] %v2007_v4 }
  0x30   :  { %455 = vmatpush.bf16.msrb.mxu0 %v1811_v19  ;;  %468 = vmatpush.bf16.msrb.mxu1 %v1813_v20 }
  0x32   :  { %481 = vmatpush.bf16.msrb.mxu2 %v1816_v24  ;;  %494 = vmatpush.bf16.msrb.mxu3 %v1818_v28 }
  0x34   :  { %456 = vmatpush.bf16.msrb.mxu0 %v1821_v32  ;;  %469 = vmatpush.bf16.msrb.mxu1 %v1825_v36 }
  0x36   :  { %482 = vmatpush.bf16.msrb.mxu2 %v1827_v37  ;;  %495 = vmatpush.bf16.msrb.mxu3 %v1830_v41 }
  0x38   :  { %457 = vmatpush.bf16.msrb.mxu0 %v1833_v47  ;;  %470 = vmatpush.bf16.msrb.mxu1 %v1837_v49 }
  0x3a   :  { %483 = vmatpush.bf16.msrb.mxu2 %v1839_v50  ;;  %496 = vmatpush.bf16.msrb.mxu3 %v1842_v54 }
  0x3c   :  { %458 = vmatpush.bf16.msrb.mxu0 %v1852_v60  ;;  %471 = vmatpush.bf16.msrb.mxu1 %v1856_v61 }
  0x3e   :  { %484 = vmatpush.bf16.msrb.mxu2 %v1858_v62  ;;  %497 = vmatpush.bf16.msrb.mxu3 %v1861_v3 }
  0x40   :  { %459 = vmatpush.bf16.msrb.mxu0 %v1864_v12  ;;  %472 = vmatpush.bf16.msrb.mxu1 %v1868_v13 }
  0x42   :  { %485 = vmatpush.bf16.msrb.mxu2 %v1870_v14  ;;  %498 = vmatpush.bf16.msrb.mxu3 %v1873_v21 }
  0x44   :  { %460 = vmatpush.bf16.msrb.mxu0 %v1876_v30  ;;  %473 = vmatpush.bf16.msrb.mxu1 %v1881_v33 }
  0x46   :  { %486 = vmatpush.bf16.msrb.mxu2 %v1883_v34  ;;  %499 = vmatpush.bf16.msrb.mxu3 %v1886_v39 }
  0x48   :  { %461 = vmatpush.bf16.msrb.mxu0 %v1889_v46  ;;  %474 = vmatpush.bf16.msrb.mxu1 %v1893_v48 }
  0x4a   :  { %487 = vmatpush.bf16.msrb.mxu2 %v1895_v51  ;;  %500 = vmatpush.bf16.msrb.mxu3 %v1898_v52 }
  0x4c   :  { %565 = vmatpush.bf16.msra.mxu0 %v1800_v6  ;;  %578 = vmatpush.bf16.msra.mxu1 %v1802_v10 }
  0x4e   :  { %591 = vmatpush.bf16.msra.mxu2 %v1804_v11  ;;  %604 = vmatpush.bf16.msra.mxu3 %v1807_v15 }
  0x50   :  { %566 = vmatpush.bf16.msra.mxu0 %v1811_v19  ;;  %579 = vmatpush.bf16.msra.mxu1 %v1813_v20 }
  0x52   :  { %592 = vmatpush.bf16.msra.mxu2 %v1816_v24  ;;  %605 = vmatpush.bf16.msra.mxu3 %v1818_v28 }
  0x54   :  { %567 = vmatpush.bf16.msra.mxu0 %v1821_v32  ;;  %580 = vmatpush.bf16.msra.mxu1 %v1825_v36 }
  0x56   :  { %593 = vmatpush.bf16.msra.mxu2 %v1827_v37  ;;  %606 = vmatpush.bf16.msra.mxu3 %v1830_v41 }
  0x58   :  { %568 = vmatpush.bf16.msra.mxu0 %v1833_v47  ;;  %581 = vmatpush.bf16.msra.mxu1 %v1837_v49 }
  0x5a   :  { %594 = vmatpush.bf16.msra.mxu2 %v1839_v50  ;;  %607 = vmatpush.bf16.msra.mxu3 %v1842_v54 }
  0x5c   :  { %569 = vmatpush.bf16.msra.mxu0 %v1852_v60  ;;  %582 = vmatpush.bf16.msra.mxu1 %v1856_v61 }
  0x5e   :  { %595 = vmatpush.bf16.msra.mxu2 %v1858_v62  ;;  %608 = vmatpush.bf16.msra.mxu3 %v1861_v3 }
  0x60   :  { %570 = vmatpush.bf16.msra.mxu0 %v1864_v12  ;;  %583 = vmatpush.bf16.msra.mxu1 %v1868_v13 }
  0x62   :  { %596 = vmatpush.bf16.msra.mxu2 %v1870_v14  ;;  %609 = vmatpush.bf16.msra.mxu3 %v1873_v21 }
  0x64   :  { %571 = vmatpush.bf16.msra.mxu0 %v1876_v30  ;;  %584 = vmatpush.bf16.msra.mxu1 %v1881_v33 }
  0x66   :  { %597 = vmatpush.bf16.msra.mxu2 %v1883_v34  ;;  %610 = vmatpush.bf16.msra.mxu3 %v1886_v39 }
  0x68   :  { %572 = vmatpush.bf16.msra.mxu0 %v1889_v46  ;;  %585 = vmatpush.bf16.msra.mxu1 %v1893_v48 }
  0x6a   :  { %598 = vmatpush.bf16.msra.mxu2 %v1895_v51  ;;  %611 = vmatpush.bf16.msra.mxu3 %v1898_v52 }
  0x88   :  { %v102_v1 = vpop.permute.xlu0 %101 }
  0x89   :  { %v118_v22 = vmul.f32 %v1978_v0, %v102_v1  ;;  %v119_v27 = vmul.f32 %v1982_v5, %v102_v1  ;;  %v148_v35 = vpop.permute.xlu1 %147  ;;  %v120_v9 = vmul.f32 %v1994_v40, %v102_v1  ;;  %v121_v18 = vmul.f32 %v1998_v44, %v102_v1 }
  0x8a   :  { %v162_v53 = vmul.f32 %v1988_v26, %v148_v35  ;;  %v163_v58 = vmul.f32 %v1992_v31, %v148_v35  ;;  %v165_v38 = vmul.f32 %v2011_v16, %v148_v35 }
  0x91   :  { %v124_v8 = vpop.permute.xlu0 %123 }
  0x92   :  { %v138_v25 = vmul.f32 %v1980_v2, %v124_v8  ;;  %v139_v29 = vmul.f32 %v1984_v7, %v124_v8  ;;  %v140_v63 = vmul.f32 %v1996_v42, %v124_v8  ;;  %v141_v23 = vmul.f32 %v2000_v45, %v124_v8 }
  0x94   :  { %v142_v56 = vadd.f32 %v138_v25, %v118_v22  ;;  %v143_v59 = vadd.f32 %v139_v29, %v119_v27  ;;  %v2017_v22 = vperm.slane %v98_v55, 1  ;;  %v1700_v25 = vmov 3  }
  0x95   :  { %1559 = vset.pattern.permute.xlu1 %v1700_v25  ;;  %v164_v27 = vmul.f32 %v2007_v4, %v148_v35  ;;  %v144_v29 = vadd.f32 %v140_v63, %v120_v9  ;;  %v145_v40 = vadd.f32 %v141_v23, %v121_v18  ;;  %v1701_v25 = vmov 4  }
  0x96   :  { %v166_v26 = vadd.f32 %v162_v53, %v142_v56  ;;  %v167_v5 = vadd.f32 %v163_v58, %v143_v59  ;;  %418 = vperm.xlu1 %1559, %v1847_v57   ;;  %v2024_v59 = vperm.slane %v98_v55, 2  ;;  %1560 = vset.pattern.permute.xlu2 %v1701_v25  ;;  %v2026_v4 = vperm.slane %v98_v55, 3 }
  0x97   :  { %v168_v58 = vadd.f32 %v164_v27, %v144_v29  ;;  %v169_v45 = vadd.f32 %v165_v38, %v145_v40  ;;  %426 = vperm.xlu2 %1560, %v1847_v57   ;;  %v1702_v55 = vmov 5  }
  0x98   :  { %v179_v43 = vadd.f32 %v2013_v17, %v166_v26  ;;  %v180_v1 = vadd.f32 %v2017_v22, %v167_v5 }
  0x99   :  { %v181_v26 = vadd.f32 %v2024_v59, %v168_v58 }
  0x9f   :  { %1561 = vset.pattern.permute.xlu2 %v1702_v55 }
  0xa0   :  { %438 = vperm.xlu2 %1561, %v1847_v57  }
  0xa8   :  { %v352_v42 = vpop.f32.mrf.mxu0  ;;  %v365_v53 = vpop.f32.mrf.mxu1 }
  0xa9   :  { %v395_v8 = vadd.f32 %v352_v42, %v179_v43  ;;  %v396_v56 = vadd.f32 %v365_v53, %v180_v1  ;;  %v182_v42 = vadd.f32 %v2026_v4, %v169_v45 }
  0xab   :  { %v399_v44 = vmul.f32 0.5, %v395_v8  ;;  %v403_v35 = vmul.f32 0.5, %v396_v56 }
  0xad   :  { %1587 = vtanh.f32 %v399_v44 }
  0xae   :  { %1589 = vtanh.f32 %v403_v35 }
  0xb0   :  { %v378_v5 = vpop.f32.mrf.mxu2  ;;  %v391_v63 = vpop.f32.mrf.mxu3 }
  0xb1   :  { %v397_v9 = vadd.f32 %v378_v5, %v181_v26  ;;  %v354_v18 = vpop.f32.mrf.mxu0  ;;  %v398_v23 = vadd.f32 %v391_v63, %v182_v42  ;;  %v367_v27 = vpop.f32.mrf.mxu1 }
  0xb3   :  { %1591 = vtanh.f32 %v397_v9  ;;  %v1588_v29 = vpop.eup %1587  ;;  %v408_v40 = vmul.f32 0.5, %v398_v23 }
  0xb4   :  { %v1590_v38 = vpop.eup %1589  ;;  %v401_v43 = vmul.f32 0.5, %v1588_v29 }
  0xb5   :  { %v405_v44 = vmul.f32 0.5, %v1590_v38  ;;  %1593 = vtanh.f32 %v408_v40  ;;  %v2520_v38 = vld [vmem:[#allocation10_spill] sm:$0xff] }
  0xb6   :  { %v402_v1 = vadd.f32 0.5, %v401_v43 }
  0xb7   :  { %v406_v8 = vadd.f32 0.5, %v405_v44 }
  0xb8   :  { %v380_v53 = vpop.f32.mrf.mxu2  ;;  %v393_v56 = vpop.f32.mrf.mxu3 }
  0xb9   :  { %v1592_v45 = vpop.eup %1591  ;;  %v412_v58 = vmul.f32 0.0, %v406_v8 }
  0xba   :  { %v413_v25 = vmul.f32 %v1592_v45, %v402_v1  ;;  %v2521_v1 = vld [vmem:[#allocation12_spill] sm:$0xff] }
  0xbb   :  { %v1594_v35 = vpop.eup %1593 }
  0xbc   :  { %v2032_v26 = vadd.f32 %v413_v25, %v412_v58  ;;  %v410_v5 = vmul.f32 0.5, %v1594_v35  ;;  %v2522_v58 = vld [vmem:[#allocation15_spill] sm:$0xff]  ;;  %v2523_v35 = vld [vmem:[#allocation17_spill] sm:$0xff] }
  0xbe   :  { %1595 = vtanh.f32 %v2032_v26  ;;  %v411_v42 = vadd.f32 0.5, %v410_v5 }
  0xc4   :  { %v1596_v9 = vpop.eup %1595 }
  0xc5   :  { %v416_v63 = vmul.f32 %v1596_v9, %v411_v42  ;;  %v2524_v42 = vld [vmem:[#allocation14_spill] sm:$0xff] }
  0xc7   :  { %v453_v18 = vpack.c.bf16 %v416_v63, %v416_v63  ;;  %v2525_v63 = vld [vmem:[#allocation16_spill] sm:$0xff] }
  0xc9   :  { %462 = vmatmul.bf16.vlgmr.msrb.gmra.mxu0 %v453_v18  ;;  %475 = vmatmul.bf16.vlgmr.msrb.gmra.mxu1 %v453_v18 }
  0xca   :  { %488 = vmatmul.bf16.vlgmr.msrb.gmra.mxu2 %v453_v18  ;;  %501 = vmatmul.bf16.vlgmr.msrb.gmra.mxu3 %v453_v18 }
  0xcb   :  { %676 = vmatpush.bf16.msrb.mxu0 %v1800_v6  ;;  %689 = vmatpush.bf16.msrb.mxu1 %v1802_v10 }
  0xcc   :  { %702 = vmatpush.bf16.msrb.mxu2 %v1804_v11  ;;  %715 = vmatpush.bf16.msrb.mxu3 %v1807_v15 }
  0xcf   :  { %677 = vmatpush.bf16.msrb.mxu0 %v1811_v19  ;;  %690 = vmatpush.bf16.msrb.mxu1 %v1813_v20 }
  0xd0   :  { %703 = vmatpush.bf16.msrb.mxu2 %v1816_v24  ;;  %716 = vmatpush.bf16.msrb.mxu3 %v1818_v28 }
  0xd3   :  { %678 = vmatpush.bf16.msrb.mxu0 %v1821_v32  ;;  %691 = vmatpush.bf16.msrb.mxu1 %v1825_v36 }
  0xd4   :  { %704 = vmatpush.bf16.msrb.mxu2 %v1827_v37  ;;  %717 = vmatpush.bf16.msrb.mxu3 %v1830_v41 }
  0xd7   :  { %679 = vmatpush.bf16.msrb.mxu0 %v1833_v47  ;;  %692 = vmatpush.bf16.msrb.mxu1 %v1837_v49 }
  0xd8   :  { %705 = vmatpush.bf16.msrb.mxu2 %v1839_v50  ;;  %718 = vmatpush.bf16.msrb.mxu3 %v1842_v54 }
  0xdb   :  { %680 = vmatpush.bf16.msrb.mxu0 %v1852_v60  ;;  %693 = vmatpush.bf16.msrb.mxu1 %v1856_v61 }
  0xdc   :  { %706 = vmatpush.bf16.msrb.mxu2 %v1858_v62  ;;  %719 = vmatpush.bf16.msrb.mxu3 %v1861_v3 }
  0xdf   :  { %681 = vmatpush.bf16.msrb.mxu0 %v1864_v12  ;;  %694 = vmatpush.bf16.msrb.mxu1 %v1868_v13 }
  0xe0   :  { %707 = vmatpush.bf16.msrb.mxu2 %v1870_v14  ;;  %720 = vmatpush.bf16.msrb.mxu3 %v1873_v21 }
  0xe3   :  { %682 = vmatpush.bf16.msrb.mxu0 %v1876_v30  ;;  %695 = vmatpush.bf16.msrb.mxu1 %v1881_v33 }
  0xe4   :  { %708 = vmatpush.bf16.msrb.mxu2 %v1883_v34  ;;  %721 = vmatpush.bf16.msrb.mxu3 %v1886_v39 }
  0xe7   :  { %683 = vmatpush.bf16.msrb.mxu0 %v1889_v46  ;;  %696 = vmatpush.bf16.msrb.mxu1 %v1893_v48 }
  0xe8   :  { %709 = vmatpush.bf16.msrb.mxu2 %v1895_v51  ;;  %722 = vmatpush.bf16.msrb.mxu3 %v1898_v52 }
  0xf1   :  { %v427_v23 = vpop.permute.xlu2 %426 }
  0xf2   :  { %v429_v29 = vmul.f32 %v427_v23, %v1980_v2  ;;  %v430_v40 = vmul.f32 %v427_v23, %v1984_v7  ;;  %v431_v25 = vmul.f32 %v427_v23, %v2522_v58  ;;  %v432_v5 = vmul.f32 %v427_v23, %v2523_v35 }
  0xf3   :  { %v1703_v58 = vmov 6  }
  0xf4   :  { %1562 = vset.pattern.permute.xlu1 %v1703_v58 }
  0xf5   :  { %529 = vperm.xlu1 %1562, %v1847_v57  }
  0xfa   :  { %v439_v44 = vpop.permute.xlu2 %438 }
  0xfb   :  { %v441_v8 = vmul.f32 %v439_v44, %v2521_v1  ;;  %v442_v53 = vmul.f32 %v439_v44, %v1992_v31 }
 0x108   :  { %v419_v27 = vpop.permute.xlu1 %418 }
 0x109   :  { %v421_v55 = vmul.f32 %v419_v27, %v1978_v0  ;;  %v422_v43 = vmul.f32 %v419_v27, %v2520_v38  ;;  %v423_v9 = vmul.f32 %v419_v27, %v2524_v42  ;;  %v424_v18 = vmul.f32 %v419_v27, %v2525_v63  ;;  %v2526_v0 = vld [vmem:[#allocation18_spill] sm:$0xff] }
 0x10a   :  { %v443_v52 = vmul.f32 %v439_v44, %v2526_v0  ;;  %v444_v38 = vmul.f32 %v439_v44, %v2011_v16  ;;  %v1704_v27 = vmov 8   ;;  %v1705_v44 = vmov 7  }
 0x10b   :  { %v433_v45 = vadd.f32 %v429_v29, %v421_v55  ;;  %v434_v56 = vadd.f32 %v430_v40, %v422_v43  ;;  %v435_v51 = vadd.f32 %v431_v25, %v423_v9  ;;  %v436_v1 = vadd.f32 %v432_v5, %v424_v18  ;;  %1564 = vset.pattern.permute.xlu0 %v1704_v27 }
 0x10c   :  { %549 = vperm.xlu0 %1564, %v1847_v57   ;;  %1563 = vset.pattern.permute.xlu2 %v1705_v44 }
 0x10d   :  { %v445_v7 = vadd.f32 %v441_v8, %v433_v45  ;;  %v446_v2 = vadd.f32 %v442_v53, %v434_v56  ;;  %v447_v35 = vadd.f32 %v443_v52, %v435_v51  ;;  %v448_v42 = vadd.f32 %v444_v38, %v436_v1  ;;  %537 = vperm.xlu2 %1563, %v1847_v57  }
 0x10f   :  { %v449_v31 = vadd.f32 %v445_v7, %v2013_v17  ;;  %v450_v29 = vadd.f32 %v446_v2, %v2017_v22  ;;  %v451_v2 = vadd.f32 %v447_v35, %v2024_v59  ;;  %v452_v51 = vadd.f32 %v448_v42, %v2026_v4 }
 0x146   :  { %v463_v40 = vpop.f32.mrf.mxu0  ;;  %v476_v55 = vpop.f32.mrf.mxu1 }
 0x147   :  { %v506_v43 = vadd.f32 %v463_v40, %v449_v31  ;;  %v507_v23 = vadd.f32 %v476_v55, %v450_v29 }
 0x149   :  { %v510_v8 = vmul.f32 0.5, %v506_v43  ;;  %v514_v53 = vmul.f32 0.5, %v507_v23 }
 0x14b   :  { %1597 = vtanh.f32 %v510_v8 }
 0x14c   :  { %1599 = vtanh.f32 %v514_v53 }
 0x14d   :  { %v489_v52 = vpop.f32.mrf.mxu2  ;;  %v502_v7 = vpop.f32.mrf.mxu3 }
 0x14e   :  { %v508_v31 = vadd.f32 %v489_v52, %v451_v2  ;;  %v509_v38 = vadd.f32 %v502_v7, %v452_v51  ;;  %v465_v1 = vpop.f32.mrf.mxu0  ;;  %v478_v45 = vpop.f32.mrf.mxu1  ;;  %v2528_v52 = vld [vmem:[#allocation7_spill] sm:$0xff] }
 0x14f   :  { %v2530_v45 = vld [vmem:[#allocation11_spill] sm:$0xff] }
 0x150   :  { %1601 = vtanh.f32 %v508_v31  ;;  %v519_v56 = vmul.f32 0.5, %v509_v38  ;;  %v2529_v38 = vld [vmem:[#allocation9_spill] sm:$0xff] }
 0x151   :  { %v1598_v58 = vpop.eup %1597 }
 0x152   :  { %v1600_v25 = vpop.eup %1599  ;;  %v512_v5 = vmul.f32 0.5, %v1598_v58  ;;  %1603 = vtanh.f32 %v519_v56  ;;  %v2531_v58 = vld [vmem:[#allocation8_spill] sm:$0xff] }
 0x153   :  { %v516_v9 = vmul.f32 0.5, %v1600_v25 }
 0x154   :  { %v513_v18 = vadd.f32 0.5, %v512_v5  ;;  %v2532_v5 = vld [vmem:[#allocation10_spill] sm:$0xff] }
 0x155   :  { %v517_v29 = vadd.f32 0.5, %v516_v9  ;;  %v491_v40 = vpop.f32.mrf.mxu2  ;;  %v504_v55 = vpop.f32.mrf.mxu3 }
 0x156   :  { %v1602_v35 = vpop.eup %1601  ;;  %v2533_v40 = vld [vmem:[#allocation12_spill] sm:$0xff] }
 0x157   :  { %v523_v42 = vmul.f32 %v517_v29, %v2032_v26  ;;  %v524_v43 = vmul.f32 %v1602_v35, %v513_v18  ;;  %v2527_v26 = vld [vmem:[#allocation6_spill] sm:$0xff]  ;;  %v1706_v29 = vmov 9   ;;  %v2534_v35 = vld [vmem:[#allocation13_spill] sm:$0xff] }
 0x158   :  { %v1604_v23 = vpop.eup %1603  ;;  %1565 = vset.pattern.permute.xlu1 %v1706_v29 }
 0x159   :  { %v2087_v27 = vadd.f32 %v524_v43, %v523_v42  ;;  %v521_v8 = vmul.f32 0.5, %v1604_v23  ;;  %640 = vperm.xlu1 %1565, %v1847_v57  }
 0x15b   :  { %1605 = vtanh.f32 %v2087_v27  ;;  %v522_v53 = vadd.f32 0.5, %v521_v8 }
 0x161   :  { %v1606_v44 = vpop.eup %1605 }
 0x162   :  { %v527_v2 = vmul.f32 %v1606_v44, %v522_v53  ;;  %v2535_v44 = vld [vmem:[#allocation15_spill] sm:$0xff] }
 0x164   :  { %v564_v51 = vpack.c.bf16 %v527_v2, %v527_v2 }
 0x166   :  { %573 = vmatmul.bf16.vlgmr.msra.gmra.mxu0 %v564_v51  ;;  %586 = vmatmul.bf16.vlgmr.msra.gmra.mxu1 %v564_v51 }
 0x167   :  { %599 = vmatmul.bf16.vlgmr.msra.gmra.mxu2 %v564_v51  ;;  %612 = vmatmul.bf16.vlgmr.msra.gmra.mxu3 %v564_v51  ;;  %v538_v7 = vpop.permute.xlu2 %537  ;;  %v530_v31 = vpop.permute.xlu1 %529  ;;  %v2536_v51 = vld [vmem:[#allocation17_spill] sm:$0xff] }
 0x168   :  { %787 = vmatpush.bf16.msra.mxu0 %v1800_v6  ;;  %800 = vmatpush.bf16.msra.mxu1 %v1802_v10  ;;  %v540_v1 = vmul.f32 %v538_v7, %v2529_v38  ;;  %v541_v56 = vmul.f32 %v538_v7, %v2530_v45  ;;  %v532_v25 = vmul.f32 %v530_v31, %v2531_v58  ;;  %v2537_v38 = vld [vmem:[#allocation14_spill] sm:$0xff] }
 0x169   :  { %813 = vmatpush.bf16.msra.mxu2 %v1804_v11  ;;  %826 = vmatpush.bf16.msra.mxu3 %v1807_v15  ;;  %v533_v9 = vmul.f32 %v530_v31, %v2532_v5  ;;  %v542_v2 = vmul.f32 %v538_v7, %v2535_v44  ;;  %v543_v45 = vmul.f32 %v538_v7, %v2536_v51  ;;  %v1708_v51 = vmov 10  }
 0x16a   :  { %v544_v43 = vadd.f32 %v540_v1, %v532_v25  ;;  %v534_v58 = vmul.f32 %v530_v31, %v2537_v38  ;;  %v535_v5 = vmul.f32 %v530_v31, %v2525_v63  ;;  %1566 = vset.pattern.permute.xlu2 %v1708_v51 }
 0x16b   :  { %v545_v23 = vadd.f32 %v541_v56, %v533_v9  ;;  %648 = vperm.xlu2 %1566, %v1847_v57  }
 0x16c   :  { %788 = vmatpush.bf16.msra.mxu0 %v1811_v19  ;;  %801 = vmatpush.bf16.msra.mxu1 %v1813_v20  ;;  %v546_v25 = vadd.f32 %v542_v2, %v534_v58  ;;  %v547_v9 = vadd.f32 %v543_v45, %v535_v5 }
 0x16d   :  { %814 = vmatpush.bf16.msra.mxu2 %v1816_v24  ;;  %827 = vmatpush.bf16.msra.mxu3 %v1818_v28 }
 0x170   :  { %789 = vmatpush.bf16.msra.mxu0 %v1821_v32  ;;  %802 = vmatpush.bf16.msra.mxu1 %v1825_v36 }
 0x171   :  { %815 = vmatpush.bf16.msra.mxu2 %v1827_v37  ;;  %828 = vmatpush.bf16.msra.mxu3 %v1830_v41 }
 0x174   :  { %790 = vmatpush.bf16.msra.mxu0 %v1833_v47  ;;  %803 = vmatpush.bf16.msra.mxu1 %v1837_v49 }
 0x175   :  { %816 = vmatpush.bf16.msra.mxu2 %v1839_v50  ;;  %829 = vmatpush.bf16.msra.mxu3 %v1842_v54 }
 0x178   :  { %791 = vmatpush.bf16.msra.mxu0 %v1852_v60  ;;  %804 = vmatpush.bf16.msra.mxu1 %v1856_v61 }
 0x179   :  { %817 = vmatpush.bf16.msra.mxu2 %v1858_v62  ;;  %830 = vmatpush.bf16.msra.mxu3 %v1861_v3 }
 0x17c   :  { %792 = vmatpush.bf16.msra.mxu0 %v1864_v12  ;;  %805 = vmatpush.bf16.msra.mxu1 %v1868_v13 }
 0x17d   :  { %818 = vmatpush.bf16.msra.mxu2 %v1870_v14  ;;  %831 = vmatpush.bf16.msra.mxu3 %v1873_v21 }
 0x17e   :  { %v550_v18 = vpop.permute.xlu0 %549 }
 0x17f   :  { %v552_v55 = vmul.f32 %v550_v18, %v2533_v40  ;;  %v553_v42 = vmul.f32 %v550_v18, %v2534_v35  ;;  %v554_v1 = vmul.f32 %v550_v18, %v2526_v0  ;;  %v555_v56 = vmul.f32 %v550_v18, %v2011_v16 }
 0x180   :  { %793 = vmatpush.bf16.msra.mxu0 %v1876_v30  ;;  %806 = vmatpush.bf16.msra.mxu1 %v1881_v33 }
 0x181   :  { %819 = vmatpush.bf16.msra.mxu2 %v1883_v34  ;;  %832 = vmatpush.bf16.msra.mxu3 %v1886_v39  ;;  %v556_v8 = vadd.f32 %v552_v55, %v544_v43  ;;  %v557_v53 = vadd.f32 %v553_v42, %v545_v23  ;;  %v558_v23 = vadd.f32 %v554_v1, %v546_v25 }
 0x182   :  { %v559_v31 = vadd.f32 %v555_v56, %v547_v9 }
 0x183   :  { %v560_v29 = vadd.f32 %v556_v8, %v2013_v17  ;;  %v561_v40 = vadd.f32 %v557_v53, %v2017_v22 }
 0x184   :  { %794 = vmatpush.bf16.msra.mxu0 %v1889_v46  ;;  %807 = vmatpush.bf16.msra.mxu1 %v1893_v48  ;;  %v563_v45 = vadd.f32 %v559_v31, %v2026_v4 }
 0x185   :  { %820 = vmatpush.bf16.msra.mxu2 %v2527_v26  ;;  %833 = vmatpush.bf16.msra.mxu3 %v2528_v52  ;;  %v1707_v52 = vmov 11  }
 0x186   :  { %1567 = vset.pattern.permute.xlu1 %v1707_v52  ;;  %v562_v52 = vadd.f32 %v558_v23, %v2024_v59 }
 0x187   :  { %660 = vperm.xlu1 %1567, %v1847_v57  }
 0x1e3   :  { %v574_v55 = vpop.f32.mrf.mxu0  ;;  %v587_v7 = vpop.f32.mrf.mxu1 }
 0x1e4   :  { %v617_v42 = vadd.f32 %v574_v55, %v560_v29  ;;  %v618_v43 = vadd.f32 %v587_v7, %v561_v40 }
 0x1e6   :  { %v621_v8 = vmul.f32 0.5, %v617_v42  ;;  %v625_v53 = vmul.f32 0.5, %v618_v43 }
 0x1e8   :  { %1607 = vtanh.f32 %v621_v8 }
 0x1e9   :  { %1609 = vtanh.f32 %v625_v53 }
 0x1ea   :  { %v600_v58 = vpop.f32.mrf.mxu2  ;;  %v613_v5 = vpop.f32.mrf.mxu3 }
 0x1eb   :  { %v619_v18 = vadd.f32 %v600_v58, %v562_v52  ;;  %v620_v2 = vadd.f32 %v613_v5, %v563_v45  ;;  %v576_v29 = vpop.f32.mrf.mxu0  ;;  %v589_v40 = vpop.f32.mrf.mxu1 }
 0x1ec   :  { %v649_v29 = vpop.permute.xlu2 %648  ;;  %v2539_v40 = vld [vmem:[#allocation8_spill] sm:$0xff] }
 0x1ed   :  { %1611 = vtanh.f32 %v619_v18  ;;  %v630_v1 = vmul.f32 0.5, %v620_v2  ;;  %v641_v2 = vpop.permute.xlu1 %640 }
 0x1ee   :  { %v1608_v56 = vpop.eup %1607 }
 0x1ef   :  { %v1610_v51 = vpop.eup %1609  ;;  %v623_v25 = vmul.f32 0.5, %v1608_v56  ;;  %1613 = vtanh.f32 %v630_v1  ;;  %v643_v1 = vmul.f32 %v641_v2, %v2539_v40  ;;  %v2540_v56 = vld [vmem:[#allocation10_spill] sm:$0xff] }
 0x1f0   :  { %v627_v9 = vmul.f32 0.5, %v1610_v51  ;;  %v644_v51 = vmul.f32 %v641_v2, %v2540_v56 }
 0x1f1   :  { %v624_v57 = vadd.f32 0.5, %v623_v25  ;;  %v2541_v25 = vld [vmem:[#allocation9_spill] sm:$0xff] }
 0x1f2   :  { %v628_v55 = vadd.f32 0.5, %v627_v9  ;;  %v602_v7 = vpop.f32.mrf.mxu2  ;;  %v615_v42 = vpop.f32.mrf.mxu3  ;;  %v651_v9 = vmul.f32 %v649_v29, %v2541_v25 }
 0x1f3   :  { %v1612_v43 = vpop.eup %1611  ;;  %v2543_v42 = vld [vmem:[#allocation12_spill] sm:$0xff] }
 0x1f4   :  { %v634_v23 = vmul.f32 %v628_v55, %v2087_v27  ;;  %v635_v31 = vmul.f32 %v1612_v43, %v624_v57  ;;  %v2538_v27 = vld [vmem:[#allocation7_spill] sm:$0xff] }
 0x1f5   :  { %v1614_v8 = vpop.eup %1613  ;;  %v2542_v57 = vld [vmem:[#allocation11_spill] sm:$0xff] }
 0x1f6   :  { %v2142_v53 = vadd.f32 %v635_v31, %v634_v23  ;;  %v632_v52 = vmul.f32 0.5, %v1614_v8  ;;  %v652_v55 = vmul.f32 %v649_v29, %v2542_v57  ;;  %v655_v31 = vadd.f32 %v651_v9, %v643_v1 }
 0x1f8   :  { %1615 = vtanh.f32 %v2142_v53  ;;  %v633_v45 = vadd.f32 0.5, %v632_v52  ;;  %v656_v8 = vadd.f32 %v652_v55, %v644_v51  ;;  %v645_v52 = vmul.f32 %v641_v2, %v2537_v38 }
 0x1f9   :  { %v661_v7 = vpop.permute.xlu1 %660  ;;  %v1709_v38 = vmov 13  }
 0x1fa   :  { %v663_v43 = vmul.f32 %v661_v7, %v2543_v42  ;;  %v664_v23 = vmul.f32 %v661_v7, %v2534_v35  ;;  %v665_v25 = vmul.f32 %v661_v7, %v2526_v0  ;;  %v666_v57 = vmul.f32 %v661_v7, %v2011_v16  ;;  %1569 = vset.pattern.permute.xlu0 %v1709_v38  ;;  %v2194_v7 = vld [vmem:[%s2462_s0] sm:$0xff] }
 0x1fb   :  { %759 = vperm.xlu0 %1569, %v2194_v7  }
 0x1fc   :  { %v667_v56 = vadd.f32 %v663_v43, %v655_v31  ;;  %v668_v40 = vadd.f32 %v664_v23, %v656_v8 }
 0x1fe   :  { %v1616_v58 = vpop.eup %1615  ;;  %v671_v35 = vadd.f32 %v667_v56, %v2013_v17  ;;  %v672_v1 = vadd.f32 %v668_v40, %v2017_v22  ;;  %v1711_v40 = vmov 12  }
 0x1ff   :  { %v638_v5 = vmul.f32 %v1616_v58, %v633_v45  ;;  %v646_v45 = vmul.f32 %v641_v2, %v2525_v63  ;;  %v653_v58 = vmul.f32 %v649_v29, %v2535_v44  ;;  %1568 = vset.pattern.permute.xlu2 %v1711_v40 }
 0x200   :  { %751 = vperm.xlu2 %1568, %v2194_v7  }
 0x201   :  { %v675_v18 = vpack.c.bf16 %v638_v5, %v638_v5  ;;  %v2544_v5 = vld [vmem:[#allocation17_spill] sm:$0xff] }
 0x203   :  { %684 = vmatmul.bf16.vlgmr.msrb.gmra.mxu0 %v675_v18  ;;  %697 = vmatmul.bf16.vlgmr.msrb.gmra.mxu1 %v675_v18 }
 0x204   :  { %710 = vmatmul.bf16.vlgmr.msrb.gmra.mxu2 %v675_v18  ;;  %723 = vmatmul.bf16.vlgmr.msrb.gmra.mxu3 %v675_v18  ;;  %v654_v18 = vmul.f32 %v649_v29, %v2544_v5  ;;  %v1710_v29 = vmov 14  }
 0x205   :  { %898 = vmatpush.bf16.msrb.mxu0 %v1800_v6  ;;  %911 = vmatpush.bf16.msrb.mxu1 %v1802_v10 }
 0x206   :  { %924 = vmatpush.bf16.msrb.mxu2 %v1804_v11  ;;  %937 = vmatpush.bf16.msrb.mxu3 %v1807_v15  ;;  %v658_v42 = vadd.f32 %v654_v18, %v646_v45 }
 0x207   :  { %1570 = vset.pattern.permute.xlu1 %v1710_v29 }
 0x208   :  { %v670_v44 = vadd.f32 %v666_v57, %v658_v42  ;;  %771 = vperm.xlu1 %1570, %v2194_v7  }
 0x209   :  { %899 = vmatpush.bf16.msrb.mxu0 %v1811_v19  ;;  %912 = vmatpush.bf16.msrb.mxu1 %v1813_v20 }
 0x20a   :  { %925 = vmatpush.bf16.msrb.mxu2 %v1816_v24  ;;  %938 = vmatpush.bf16.msrb.mxu3 %v1818_v28 }
 0x20d   :  { %900 = vmatpush.bf16.msrb.mxu0 %v1821_v32  ;;  %913 = vmatpush.bf16.msrb.mxu1 %v1825_v36 }
 0x20e   :  { %926 = vmatpush.bf16.msrb.mxu2 %v1827_v37  ;;  %939 = vmatpush.bf16.msrb.mxu3 %v1830_v41 }
 0x211   :  { %901 = vmatpush.bf16.msrb.mxu0 %v1833_v47  ;;  %914 = vmatpush.bf16.msrb.mxu1 %v1837_v49 }
 0x212   :  { %927 = vmatpush.bf16.msrb.mxu2 %v1839_v50  ;;  %940 = vmatpush.bf16.msrb.mxu3 %v1842_v54 }
 0x215   :  { %902 = vmatpush.bf16.msrb.mxu0 %v1852_v60  ;;  %915 = vmatpush.bf16.msrb.mxu1 %v1856_v61 }
 0x216   :  { %928 = vmatpush.bf16.msrb.mxu2 %v1858_v62  ;;  %941 = vmatpush.bf16.msrb.mxu3 %v1861_v3 }
 0x219   :  { %903 = vmatpush.bf16.msrb.mxu0 %v1864_v12  ;;  %916 = vmatpush.bf16.msrb.mxu1 %v1868_v13 }
 0x21a   :  { %929 = vmatpush.bf16.msrb.mxu2 %v1870_v14  ;;  %942 = vmatpush.bf16.msrb.mxu3 %v1873_v21 }
 0x21d   :  { %904 = vmatpush.bf16.msrb.mxu0 %v1876_v30  ;;  %917 = vmatpush.bf16.msrb.mxu1 %v1881_v33 }
 0x21e   :  { %930 = vmatpush.bf16.msrb.mxu2 %v1883_v34  ;;  %943 = vmatpush.bf16.msrb.mxu3 %v1886_v39 }
 0x221   :  { %905 = vmatpush.bf16.msrb.mxu0 %v1889_v46  ;;  %918 = vmatpush.bf16.msrb.mxu1 %v1893_v48 }
 0x222   :  { %931 = vmatpush.bf16.msrb.mxu2 %v2527_v26  ;;  %944 = vmatpush.bf16.msrb.mxu3 %v2538_v27  ;;  %v657_v27 = vadd.f32 %v653_v58, %v645_v52 }
 0x224   :  { %v669_v63 = vadd.f32 %v665_v25, %v657_v27 }
 0x226   :  { %v673_v38 = vadd.f32 %v669_v63, %v2024_v59 }
 0x280   :  { %v685_v51 = vpop.f32.mrf.mxu0  ;;  %v698_v9 = vpop.f32.mrf.mxu1 }
 0x281   :  { %v728_v55 = vadd.f32 %v685_v51, %v671_v35  ;;  %v729_v2 = vadd.f32 %v698_v9, %v672_v1  ;;  %v674_v35 = vadd.f32 %v670_v44, %v2026_v4 }
 0x283   :  { %v732_v43 = vmul.f32 0.5, %v728_v55  ;;  %v736_v23 = vmul.f32 0.5, %v729_v2 }
 0x285   :  { %1617 = vtanh.f32 %v732_v43 }
 0x286   :  { %1619 = vtanh.f32 %v736_v23 }
 0x287   :  { %v711_v27 = vpop.f32.mrf.mxu2  ;;  %v724_v56 = vpop.f32.mrf.mxu3 }
 0x288   :  { %v730_v25 = vadd.f32 %v711_v27, %v673_v38  ;;  %v731_v57 = vadd.f32 %v724_v56, %v674_v35  ;;  %v687_v42 = vpop.f32.mrf.mxu0  ;;  %v700_v31 = vpop.f32.mrf.mxu1 }
 0x289   :  { %v752_v56 = vpop.permute.xlu2 %751  ;;  %v2547_v31 = vld [vmem:[#allocation10_spill] sm:$0xff] }
 0x28a   :  { %1621 = vtanh.f32 %v730_v25  ;;  %v741_v8 = vmul.f32 0.5, %v731_v57  ;;  %v760_v25 = vpop.permute.xlu0 %759  ;;  %v2546_v57 = vld [vmem:[#allocation8_spill] sm:$0xff] }
 0x28b   :  { %v1618_v52 = vpop.eup %1617  ;;  %v754_v42 = vmul.f32 %v752_v56, %v2546_v57  ;;  %v2554_v57 = vld [vmem:[#allocation15_spill] sm:$0xff] }
 0x28c   :  { %v1620_v45 = vpop.eup %1619  ;;  %v734_v58 = vmul.f32 0.5, %v1618_v52  ;;  %1623 = vtanh.f32 %v741_v8  ;;  %v755_v8 = vmul.f32 %v752_v56, %v2547_v31  ;;  %v2548_v52 = vld [vmem:[#allocation9_spill] sm:$0xff]  ;;  %v765_v31 = vmul.f32 %v760_v25, %v2544_v5 }
 0x28d   :  { %v738_v18 = vmul.f32 0.5, %v1620_v45  ;;  %v762_v45 = vmul.f32 %v760_v25, %v2548_v52  ;;  %v1712_v52 = vmov 16   ;;  %v1713_v5 = vmov 15  }
 0x28e   :  { %v735_v1 = vadd.f32 0.5, %v734_v58  ;;  %v2549_v58 = vld [vmem:[#allocation11_spill] sm:$0xff]  ;;  %1572 = vset.pattern.permute.xlu1 %v1712_v52  ;;  %1571 = vset.pattern.permute.xlu2 %v1713_v5  ;;  %v1714_v5 = vmov 17  }
 0x28f   :  { %v739_v51 = vadd.f32 0.5, %v738_v18  ;;  %v713_v9 = vpop.f32.mrf.mxu2  ;;  %v726_v55 = vpop.f32.mrf.mxu3  ;;  %v763_v18 = vmul.f32 %v760_v25, %v2549_v58  ;;  %870 = vperm.xlu1 %1572, %v2194_v7   ;;  %862 = vperm.xlu2 %1571, %v2194_v7  }
 0x290   :  { %v1622_v63 = vpop.eup %1621  ;;  %v2551_v55 = vld [vmem:[#allocation13_spill] sm:$0xff] }
 0x291   :  { %v745_v44 = vmul.f32 %v739_v51, %v2142_v53  ;;  %v746_v2 = vmul.f32 %v1622_v63, %v735_v1  ;;  %v2545_v53 = vld [vmem:[#allocation7_spill] sm:$0xff]  ;;  %v772_v1 = vpop.permute.xlu1 %771  ;;  %v2550_v51 = vld [vmem:[#allocation12_spill] sm:$0xff] }
 0x292   :  { %v1624_v29 = vpop.eup %1623  ;;  %v774_v9 = vmul.f32 %v772_v1, %v2550_v51  ;;  %v775_v63 = vmul.f32 %v772_v1, %v2551_v55 }
 0x293   :  { %v2202_v43 = vadd.f32 %v746_v2, %v745_v44  ;;  %v743_v23 = vmul.f32 0.5, %v1624_v29  ;;  %v766_v44 = vadd.f32 %v762_v45, %v754_v42  ;;  %v767_v2 = vadd.f32 %v763_v18, %v755_v8  ;;  %v2552_v29 = vld [vmem:[#allocation14_spill] sm:$0xff] }
 0x294   :  { %v776_v42 = vmul.f32 %v772_v1, %v2526_v0  ;;  %v777_v8 = vmul.f32 %v772_v1, %v2011_v16 }
 0x295   :  { %1625 = vtanh.f32 %v2202_v43  ;;  %v744_v40 = vadd.f32 0.5, %v743_v23  ;;  %v756_v23 = vmul.f32 %v752_v56, %v2552_v29 }
 0x297   :  { %1573 = vset.pattern.permute.xlu2 %v1714_v5 }
 0x298   :  { %882 = vperm.xlu2 %1573, %v2194_v7  }
 0x29b   :  { %v1626_v38 = vpop.eup %1625 }
 0x29c   :  { %v749_v35 = vmul.f32 %v1626_v38, %v744_v40  ;;  %v778_v40 = vadd.f32 %v774_v9, %v766_v44  ;;  %v779_v38 = vadd.f32 %v775_v63, %v767_v2 }
 0x29e   :  { %v786_v27 = vpack.c.bf16 %v749_v35, %v749_v35  ;;  %v2553_v35 = vld [vmem:[#allocation16_spill] sm:$0xff]  ;;  %v782_v51 = vadd.f32 %v778_v40, %v2013_v17  ;;  %v783_v55 = vadd.f32 %v779_v38, %v2017_v22 }
 0x2a0   :  { %795 = vmatmul.bf16.vlgmr.msra.gmra.mxu0 %v786_v27  ;;  %808 = vmatmul.bf16.vlgmr.msra.gmra.mxu1 %v786_v27 }
 0x2a1   :  { %821 = vmatmul.bf16.vlgmr.msra.gmra.mxu2 %v786_v27  ;;  %834 = vmatmul.bf16.vlgmr.msra.gmra.mxu3 %v786_v27  ;;  %v757_v27 = vmul.f32 %v752_v56, %v2553_v35 }
 0x2a2   :  { %1009 = vmatpush.bf16.msra.mxu0 %v1800_v6  ;;  %1022 = vmatpush.bf16.msra.mxu1 %v1802_v10 }
 0x2a3   :  { %1035 = vmatpush.bf16.msra.mxu2 %v1804_v11  ;;  %1048 = vmatpush.bf16.msra.mxu3 %v1807_v15  ;;  %v769_v18 = vadd.f32 %v765_v31, %v757_v27 }
 0x2a6   :  { %1010 = vmatpush.bf16.msra.mxu0 %v1811_v19  ;;  %1023 = vmatpush.bf16.msra.mxu1 %v1813_v20 }
 0x2a7   :  { %1036 = vmatpush.bf16.msra.mxu2 %v1816_v24  ;;  %1049 = vmatpush.bf16.msra.mxu3 %v1818_v28 }
 0x2aa   :  { %1011 = vmatpush.bf16.msra.mxu0 %v1821_v32  ;;  %1024 = vmatpush.bf16.msra.mxu1 %v1825_v36 }
 0x2ab   :  { %1037 = vmatpush.bf16.msra.mxu2 %v1827_v37  ;;  %1050 = vmatpush.bf16.msra.mxu3 %v1830_v41 }
 0x2ae   :  { %1012 = vmatpush.bf16.msra.mxu0 %v1833_v47  ;;  %1025 = vmatpush.bf16.msra.mxu1 %v1837_v49 }
 0x2af   :  { %1038 = vmatpush.bf16.msra.mxu2 %v1839_v50  ;;  %1051 = vmatpush.bf16.msra.mxu3 %v1842_v54 }
 0x2b2   :  { %1013 = vmatpush.bf16.msra.mxu0 %v1852_v60  ;;  %1026 = vmatpush.bf16.msra.mxu1 %v1856_v61 }
 0x2b3   :  { %1039 = vmatpush.bf16.msra.mxu2 %v1858_v62  ;;  %1052 = vmatpush.bf16.msra.mxu3 %v1861_v3 }
 0x2b6   :  { %1014 = vmatpush.bf16.msra.mxu0 %v1864_v12  ;;  %1027 = vmatpush.bf16.msra.mxu1 %v1868_v13 }
 0x2b7   :  { %1040 = vmatpush.bf16.msra.mxu2 %v1870_v14  ;;  %1053 = vmatpush.bf16.msra.mxu3 %v1873_v21 }
 0x2ba   :  { %1015 = vmatpush.bf16.msra.mxu0 %v1876_v30  ;;  %1028 = vmatpush.bf16.msra.mxu1 %v1881_v33 }
 0x2bb   :  { %1041 = vmatpush.bf16.msra.mxu2 %v1883_v34  ;;  %1054 = vmatpush.bf16.msra.mxu3 %v1886_v39 }
 0x2be   :  { %1016 = vmatpush.bf16.msra.mxu0 %v1889_v46  ;;  %1029 = vmatpush.bf16.msra.mxu1 %v1893_v48 }
 0x2bf   :  { %1042 = vmatpush.bf16.msra.mxu2 %v2527_v26  ;;  %1055 = vmatpush.bf16.msra.mxu3 %v2545_v53  ;;  %v764_v53 = vmul.f32 %v760_v25, %v2554_v57  ;;  %v781_v25 = vadd.f32 %v777_v8, %v769_v18 }
 0x2c1   :  { %v768_v45 = vadd.f32 %v764_v53, %v756_v23  ;;  %v785_v1 = vadd.f32 %v781_v25, %v2026_v4 }
 0x2c3   :  { %v780_v2 = vadd.f32 %v776_v42, %v768_v45 }
 0x2c5   :  { %v784_v40 = vadd.f32 %v780_v2, %v2024_v59 }
 0x31d   :  { %v796_v9 = vpop.f32.mrf.mxu0  ;;  %v809_v56 = vpop.f32.mrf.mxu1 }
 0x31e   :  { %v839_v63 = vadd.f32 %v796_v9, %v782_v51  ;;  %v840_v44 = vadd.f32 %v809_v56, %v783_v55 }
 0x320   :  { %v843_v52 = vmul.f32 0.5, %v839_v63  ;;  %v847_v57 = vmul.f32 0.5, %v840_v44 }
 0x322   :  { %1627 = vtanh.f32 %v843_v52 }
 0x323   :  { %1629 = vtanh.f32 %v847_v57 }
 0x324   :  { %v822_v53 = vpop.f32.mrf.mxu2  ;;  %v835_v31 = vpop.f32.mrf.mxu3 }
 0x325   :  { %v841_v23 = vadd.f32 %v822_v53, %v784_v40  ;;  %v842_v38 = vadd.f32 %v835_v31, %v785_v1  ;;  %v798_v51 = vpop.f32.mrf.mxu0  ;;  %v811_v55 = vpop.f32.mrf.mxu1 }
 0x327   :  { %1631 = vtanh.f32 %v841_v23  ;;  %v852_v27 = vmul.f32 0.5, %v842_v38 }
 0x328   :  { %v1628_v42 = vpop.eup %1627 }
 0x329   :  { %v1630_v8 = vpop.eup %1629  ;;  %v845_v45 = vmul.f32 0.5, %v1628_v42  ;;  %1633 = vtanh.f32 %v852_v27 }
 0x32a   :  { %v849_v57 = vmul.f32 0.5, %v1630_v8  ;;  %v1715_v8 = vmov 19  }
 0x32b   :  { %v846_v18 = vadd.f32 0.5, %v845_v45  ;;  %1575 = vset.pattern.permute.xlu1 %v1715_v8  ;;  %v1716_v45 = vmov 18  }
 0x32c   :  { %v850_v9 = vadd.f32 0.5, %v849_v57  ;;  %v824_v56 = vpop.f32.mrf.mxu2  ;;  %v837_v63 = vpop.f32.mrf.mxu3  ;;  %1574 = vset.pattern.permute.xlu0 %v1716_v45  ;;  %981 = vperm.xlu1 %1575, %v2194_v7  }
 0x32d   :  { %v1632_v44 = vpop.eup %1631  ;;  %973 = vperm.xlu0 %1574, %v2194_v7  }
 0x32e   :  { %v856_v2 = vmul.f32 %v850_v9, %v2202_v43  ;;  %v857_v25 = vmul.f32 %v1632_v44, %v846_v18  ;;  %v1717_v9 = vmov 20  }
 0x32f   :  { %v1634_v52 = vpop.eup %1633  ;;  %1576 = vset.pattern.permute.xlu2 %v1717_v9 }
 0x330   :  { %v2257_v40 = vadd.f32 %v857_v25, %v856_v2  ;;  %v854_v1 = vmul.f32 0.5, %v1634_v52  ;;  %993 = vperm.xlu2 %1576, %v2194_v7  }
 0x332   :  { %1635 = vtanh.f32 %v2257_v40  ;;  %v855_v53 = vadd.f32 0.5, %v854_v1 }
 0x338   :  { %v1636_v31 = vpop.eup %1635 }
 0x339   :  { %v860_v23 = vmul.f32 %v1636_v31, %v855_v53 }
 0x33b   :  { %v897_v38 = vpack.c.bf16 %v860_v23, %v860_v23 }
 0x33d   :  { %906 = vmatmul.bf16.vlgmr.msrb.gmra.mxu0 %v897_v38  ;;  %919 = vmatmul.bf16.vlgmr.msrb.gmra.mxu1 %v897_v38 }
 0x33e   :  { %932 = vmatmul.bf16.vlgmr.msrb.gmra.mxu2 %v897_v38  ;;  %945 = vmatmul.bf16.vlgmr.msrb.gmra.mxu3 %v897_v38 }
 0x33f   :  { %1120 = vmatpush.bf16.msrb.mxu0 %v1800_v6  ;;  %1133 = vmatpush.bf16.msrb.mxu1 %v1802_v10  ;;  %v2555_v6 = vld [vmem:[#allocation7_spill] sm:$0xff]  ;;  %v863_v10 = vpop.permute.xlu2 %862 }
 0x340   :  { %1146 = vmatpush.bf16.msrb.mxu2 %v1804_v11  ;;  %1159 = vmatpush.bf16.msrb.mxu3 %v1807_v15  ;;  %v871_v11 = vpop.permute.xlu1 %870  ;;  %v2556_v15 = vld [vmem:[#allocation8_spill] sm:$0xff] }
 0x343   :  { %1121 = vmatpush.bf16.msrb.mxu0 %v1811_v19  ;;  %1134 = vmatpush.bf16.msrb.mxu1 %v1813_v20  ;;  %v865_v19 = vmul.f32 %v863_v10, %v2556_v15  ;;  %v2557_v20 = vld [vmem:[#allocation10_spill] sm:$0xff] }
 0x344   :  { %1147 = vmatpush.bf16.msrb.mxu2 %v1816_v24  ;;  %1160 = vmatpush.bf16.msrb.mxu3 %v1818_v28  ;;  %v866_v24 = vmul.f32 %v863_v10, %v2557_v20  ;;  %v2558_v28 = vld [vmem:[#allocation9_spill] sm:$0xff] }
 0x347   :  { %1122 = vmatpush.bf16.msrb.mxu0 %v1821_v32  ;;  %1135 = vmatpush.bf16.msrb.mxu1 %v1825_v36  ;;  %v873_v32 = vmul.f32 %v871_v11, %v2558_v28  ;;  %v874_v36 = vmul.f32 %v871_v11, %v2549_v58 }
 0x348   :  { %1148 = vmatpush.bf16.msrb.mxu2 %v1827_v37  ;;  %1161 = vmatpush.bf16.msrb.mxu3 %v1830_v41  ;;  %v883_v37 = vpop.permute.xlu2 %882  ;;  %v2559_v41 = vld [vmem:[#allocation12_spill] sm:$0xff] }
 0x34b   :  { %1123 = vmatpush.bf16.msrb.mxu0 %v1833_v47  ;;  %1136 = vmatpush.bf16.msrb.mxu1 %v1837_v49  ;;  %v885_v47 = vmul.f32 %v883_v37, %v2559_v41  ;;  %v2560_v49 = vld [vmem:[#allocation13_spill] sm:$0xff] }
 0x34c   :  { %1149 = vmatpush.bf16.msrb.mxu2 %v1839_v50  ;;  %1162 = vmatpush.bf16.msrb.mxu3 %v1842_v54  ;;  %v886_v50 = vmul.f32 %v883_v37, %v2560_v49  ;;  %v877_v54 = vadd.f32 %v873_v32, %v865_v19 }
 0x34f   :  { %1124 = vmatpush.bf16.msrb.mxu0 %v1852_v60  ;;  %1137 = vmatpush.bf16.msrb.mxu1 %v1856_v61  ;;  %v878_v60 = vadd.f32 %v874_v36, %v866_v24  ;;  %v867_v61 = vmul.f32 %v863_v10, %v2552_v29 }
 0x350   :  { %1150 = vmatpush.bf16.msrb.mxu2 %v1858_v62  ;;  %1163 = vmatpush.bf16.msrb.mxu3 %v1861_v3  ;;  %v868_v62 = vmul.f32 %v863_v10, %v2553_v35  ;;  %v2561_v3 = vld [vmem:[#allocation15_spill] sm:$0xff] }
 0x353   :  { %1125 = vmatpush.bf16.msrb.mxu0 %v1864_v12  ;;  %1138 = vmatpush.bf16.msrb.mxu1 %v1868_v13  ;;  %v875_v12 = vmul.f32 %v871_v11, %v2561_v3  ;;  %v2562_v13 = vld [vmem:[#allocation17_spill] sm:$0xff] }
 0x354   :  { %1151 = vmatpush.bf16.msrb.mxu2 %v1870_v14  ;;  %1164 = vmatpush.bf16.msrb.mxu3 %v1873_v21  ;;  %v876_v14 = vmul.f32 %v871_v11, %v2562_v13  ;;  %v889_v21 = vadd.f32 %v885_v47, %v877_v54 }
 0x357   :  { %1126 = vmatpush.bf16.msrb.mxu0 %v1876_v30  ;;  %1139 = vmatpush.bf16.msrb.mxu1 %v1881_v33  ;;  %v890_v30 = vadd.f32 %v886_v50, %v878_v60  ;;  %v887_v33 = vmul.f32 %v883_v37, %v2526_v0 }
 0x358   :  { %1152 = vmatpush.bf16.msrb.mxu2 %v1883_v34  ;;  %1165 = vmatpush.bf16.msrb.mxu3 %v1886_v39  ;;  %v888_v34 = vmul.f32 %v883_v37, %v2011_v16  ;;  %v879_v39 = vadd.f32 %v875_v12, %v867_v61 }
 0x35a   :  { %v891_v42 = vadd.f32 %v887_v33, %v879_v39 }
 0x35b   :  { %1127 = vmatpush.bf16.msrb.mxu0 %v1889_v46  ;;  %1140 = vmatpush.bf16.msrb.mxu1 %v1893_v48  ;;  %v880_v46 = vadd.f32 %v876_v14, %v868_v62  ;;  %v893_v48 = vadd.f32 %v889_v21, %v2013_v17 }
 0x35c   :  { %1153 = vmatpush.bf16.msrb.mxu2 %v2527_v26  ;;  %1166 = vmatpush.bf16.msrb.mxu3 %v2555_v6  ;;  %v894_v26 = vadd.f32 %v890_v30, %v2017_v22  ;;  %v895_v56 = vadd.f32 %v891_v42, %v2024_v59 }
 0x35d   :  { %v892_v5 = vadd.f32 %v888_v34, %v880_v46 }
 0x35f   :  { %v896_v63 = vadd.f32 %v892_v5, %v2026_v4 }
 0x38a   :  { %v994_v46 = vpop.permute.xlu2 %993 }
 0x38b   :  { %v998_v9 = vmul.f32 %v994_v46, %v2526_v0 }
 0x39e   :  { %v982_v21 = vpop.permute.xlu1 %981 }
 0x39f   :  { %v974_v30 = vpop.permute.xlu0 %973  ;;  %v984_v33 = vmul.f32 %v982_v21, %v2558_v28  ;;  %v986_v42 = vmul.f32 %v982_v21, %v2561_v3  ;;  %v987_v5 = vmul.f32 %v982_v21, %v2562_v13 }
 0x3a0   :  { %v976_v34 = vmul.f32 %v974_v30, %v2556_v15  ;;  %v977_v39 = vmul.f32 %v974_v30, %v2557_v20  ;;  %v978_v8 = vmul.f32 %v974_v30, %v2552_v29  ;;  %v979_v45 = vmul.f32 %v974_v30, %v2553_v35 }
 0x3ba   :  { %v907_v43 = vpop.f32.mrf.mxu0  ;;  %v920_v51 = vpop.f32.mrf.mxu1 }
 0x3bb   :  { %v950_v55 = vadd.f32 %v907_v43, %v893_v48  ;;  %v951_v27 = vadd.f32 %v920_v51, %v894_v26  ;;  %v996_v48 = vmul.f32 %v994_v46, %v2559_v41  ;;  %v997_v26 = vmul.f32 %v994_v46, %v2560_v49 }
 0x3bc   :  { %v988_v43 = vadd.f32 %v984_v33, %v976_v34 }
 0x3bd   :  { %v954_v57 = vmul.f32 0.5, %v950_v55  ;;  %v958_v18 = vmul.f32 0.5, %v951_v27 }
 0x3be   :  { %v1000_v55 = vadd.f32 %v996_v48, %v988_v43 }
 0x3bf   :  { %1637 = vtanh.f32 %v954_v57 }
 0x3c0   :  { %1639 = vtanh.f32 %v958_v18  ;;  %v1004_v57 = vadd.f32 %v1000_v55, %v2013_v17 }
 0x3c1   :  { %v933_v44 = vpop.f32.mrf.mxu2  ;;  %v946_v2 = vpop.f32.mrf.mxu3 }
 0x3c2   :  { %v952_v25 = vadd.f32 %v933_v44, %v895_v56  ;;  %v953_v52 = vadd.f32 %v946_v2, %v896_v63  ;;  %v909_v1 = vpop.f32.mrf.mxu0  ;;  %v922_v53 = vpop.f32.mrf.mxu1  ;;  %v999_v56 = vmul.f32 %v994_v46, %v2011_v16  ;;  %v990_v63 = vadd.f32 %v986_v42, %v978_v8 }
 0x3c3   :  { %v991_v44 = vadd.f32 %v987_v5, %v979_v45 }
 0x3c4   :  { %1641 = vtanh.f32 %v952_v25  ;;  %v963_v31 = vmul.f32 0.5, %v953_v52  ;;  %v1002_v53 = vadd.f32 %v998_v9, %v990_v63  ;;  %v1227_v9 = vld [vmem:[%s2468_s6 + $0x58] sm:$0xff] }
 0x3c5   :  { %v1638_v23 = vpop.eup %1637 }
 0x3c6   :  { %v1640_v38 = vpop.eup %1639  ;;  %v956_v6 = vmul.f32 0.5, %v1638_v23  ;;  %1643 = vtanh.f32 %v963_v31  ;;  %v1003_v31 = vadd.f32 %v999_v56, %v991_v44  ;;  %v1718_v23 = vmov 21   ;;  %v1226_v56 = vld [vmem:[%s2468_s6 + $0x50] sm:$0xff] }
 0x3c7   :  { %v960_v10 = vmul.f32 0.5, %v1640_v38  ;;  %1577 = vset.pattern.permute.xlu1 %v1718_v23  ;;  %v1719_v38 = vmov 23  }
 0x3c8   :  { %v957_v11 = vadd.f32 0.5, %v956_v6  ;;  %1579 = vset.pattern.permute.xlu0 %v1719_v38  ;;  %1084 = vperm.xlu1 %1577, %v2194_v7   ;;  %v1237_v38 = vld [vmem:[%s2469_s7 + $0x28] sm:$0xff] }
 0x3c9   :  { %v961_v19 = vadd.f32 0.5, %v960_v10  ;;  %v935_v24 = vpop.f32.mrf.mxu2  ;;  %v948_v32 = vpop.f32.mrf.mxu3  ;;  %1104 = vperm.xlu0 %1579, %v2194_v7  }
 0x3ca   :  { %v1642_v36 = vpop.eup %1641  ;;  %v1007_v24 = vadd.f32 %v1003_v31, %v2026_v4 }
 0x3cb   :  { %v967_v37 = vmul.f32 %v961_v19, %v2257_v40  ;;  %v968_v47 = vmul.f32 %v1642_v36, %v957_v11  ;;  %v985_v40 = vmul.f32 %v982_v21, %v2549_v58  ;;  %v1720_v11 = vmov 22  }
 0x3cc   :  { %v1644_v50 = vpop.eup %1643  ;;  %1578 = vset.pattern.permute.xlu2 %v1720_v11  ;;  %v1006_v19 = vadd.f32 %v1002_v53, %v2024_v59  ;;  %v1223_v53 = vld [vmem:[%s2468_s6 + $0x38] sm:$0xff] }
 0x3cd   :  { %v2312_v54 = vadd.f32 %v968_v47, %v967_v37  ;;  %v965_v60 = vmul.f32 0.5, %v1644_v50  ;;  %v989_v51 = vadd.f32 %v985_v40, %v977_v39  ;;  %1092 = vperm.xlu2 %1578, %v2194_v7  }
 0x3cf   :  { %1645 = vtanh.f32 %v2312_v54  ;;  %v966_v61 = vadd.f32 0.5, %v965_v60  ;;  %v1001_v27 = vadd.f32 %v997_v26, %v989_v51 }
 0x3d1   :  { %v1005_v18 = vadd.f32 %v1001_v27, %v2017_v22 }
 0x3d5   :  { %v1646_v62 = vpop.eup %1645 }
 0x3d6   :  { %v971_v12 = vmul.f32 %v1646_v62, %v966_v61 }
 0x3d8   :  { %v1008_v14 = vpack.c.bf16 %v971_v12, %v971_v12  ;;  %v1721_v12 = vmov 24  }
 0x3d9   :  { %1580 = vset.pattern.permute.xlu1 %v1721_v12 }
 0x3da   :  { %1017 = vmatmul.bf16.vlgmr.msra.gmra.mxu0 %v1008_v14  ;;  %1030 = vmatmul.bf16.vlgmr.msra.gmra.mxu1 %v1008_v14 }
 0x3db   :  { %1043 = vmatmul.bf16.vlgmr.msra.gmra.mxu2 %v1008_v14  ;;  %1056 = vmatmul.bf16.vlgmr.msra.gmra.mxu3 %v1008_v14  ;;  %v1722_v14 = vmov 25  }
 0x3dc   :  { %1582 = vset.pattern.permute.xlu0 %v1722_v14  ;;  %1196 = vperm.xlu1 %1580, %v2194_v7  }
 0x3dd   :  { %1581 = vset.pattern.permute.xlu2 %v1722_v14 }
 0x3de   :  { %1202 = vperm.xlu2 %1581, %v2194_v7   ;;  %v1231_v7 = vld [vmem:[%s2468_s6 + $0x78] sm:$0xff] }
 0x3df   :  { %1264 = vmatpush.msra.mxu1 %v1231_v7 }
 0x427   :  { %v1093_v63 = vpop.permute.xlu2 %1092 }
 0x428   :  { %v1095_v31 = vmul.f32 %v1093_v63, %v2558_v28  ;;  %v1096_v23 = vmul.f32 %v1093_v63, %v2549_v58 }
 0x43a   :  { %v1085_v44 = vpop.permute.xlu1 %1084 }
 0x43b   :  { %v1087_v11 = vmul.f32 %v1085_v44, %v2556_v15 }
 0x43d   :  { %v1099_v12 = vadd.f32 %v1095_v31, %v1087_v11 }
 0x457   :  { %v1018_v2 = vpop.f32.mrf.mxu0  ;;  %v1031_v25 = vpop.f32.mrf.mxu1 }
 0x458   :  { %v1061_v52 = vadd.f32 %v1018_v2, %v1004_v57  ;;  %v1062_v1 = vadd.f32 %v1031_v25, %v1005_v18  ;;  %v1229_v57 = vld [vmem:[%s2468_s6 + $0x68] sm:$0xff]  ;;  %v1228_v18 = vld [vmem:[%s2468_s6 + $0x60] sm:$0xff]  ;;  %v1239_v25 = vld [vmem:[%s2469_s7 + $0x38] sm:$0xff] }
 0x459   :  { %v1225_v2 = vld [vmem:[%s2468_s6 + $0x48] sm:$0xff]  ;;  %1252 = vmatpush.msra.mxu0 %v1239_v25 }
 0x45a   :  { %v1065_v6 = vmul.f32 0.5, %v1061_v52  ;;  %v1069_v10 = vmul.f32 0.5, %v1062_v1  ;;  %v1224_v52 = vld [vmem:[%s2468_s6 + $0x40] sm:$0xff]  ;;  %v1238_v1 = vld [vmem:[%s2469_s7 + $0x30] sm:$0xff] }
 0x45b   :  { %1253 = vmatpush.msra.mxu0 %v1238_v1 }
 0x45c   :  { %1647 = vtanh.f32 %v1065_v6  ;;  %v1222_v6 = vld [vmem:[%s2468_s6 + $0x30] sm:$0xff] }
 0x45d   :  { %1649 = vtanh.f32 %v1069_v10  ;;  %v1194_v10 = vld [vmem:[%s2466_s4] sm:$0x3]  ;;  %1254 = vmatpush.msra.mxu0 %v1237_v38 }
 0x45e   :  { %v1044_v32 = vpop.f32.mrf.mxu2  ;;  %v1057_v36 = vpop.f32.mrf.mxu3  ;;  %v1205_v58 = vperm.slane %v1194_v10, 1  ;;  %v1199_v28 = vperm.slane %v1194_v10, 0 }
 0x45f   :  { %v1063_v37 = vadd.f32 %v1044_v32, %v1006_v19  ;;  %v1064_v47 = vadd.f32 %v1057_v36, %v1007_v24  ;;  %v1020_v50 = vpop.f32.mrf.mxu0  ;;  %v1033_v60 = vpop.f32.mrf.mxu1  ;;  %v1088_v19 = vmul.f32 %v1085_v44, %v2557_v20 }
 0x460   :  { %v1105_v24 = vpop.permute.xlu0 %1104  ;;  %v1203_v32 = vpop.permute.xlu2 %1202 }
 0x461   :  { %1651 = vtanh.f32 %v1063_v37  ;;  %v1074_v61 = vmul.f32 0.5, %v1064_v47  ;;  %v1197_v36 = vpop.permute.xlu1 %1196  ;;  %v1236_v37 = vld [vmem:[%s2469_s7 + $0x20] sm:$0xff]  ;;  %v1221_v47 = vld [vmem:[%s2468_s6 + $0x28] sm:$0xff]  ;;  %v1206_v50 = vmul.f32 %v1205_v58, %v1203_v32  ;;  %v1107_v15 = vmul.f32 %v1105_v24, %v2559_v41  ;;  %v1234_v41 = vld [vmem:[%s2469_s7 + $0x10] sm:$0xff] }
 0x462   :  { %v1648_v62 = vpop.eup %1647  ;;  %v1200_v60 = vmul.f32 %v1199_v28, %v1197_v36  ;;  %1255 = vmatpush.msra.mxu0 %v1236_v37  ;;  %v1108_v20 = vmul.f32 %v1105_v24, %v2560_v49  ;;  %v1100_v14 = vadd.f32 %v1096_v23, %v1088_v19  ;;  %v1219_v49 = vld [vmem:[%s2468_s6 + $0x18] sm:$0xff] }
 0x463   :  { %v1650_v21 = vpop.eup %1649  ;;  %v1067_v30 = vmul.f32 0.5, %v1648_v62  ;;  %1653 = vtanh.f32 %v1074_v61  ;;  %v1235_v61 = vld [vmem:[%s2469_s7 + $0x18] sm:$0xff]  ;;  %v1220_v62 = vld [vmem:[%s2468_s6 + $0x20] sm:$0xff] }
 0x464   :  { %v1071_v33 = vmul.f32 0.5, %v1650_v21  ;;  %v1583_v21 = vld [vmem:[%s2467_s5] ss:$0 sm:$0xff]  ;;  %1256 = vmatpush.msra.mxu0 %v1235_v61 }
 0x465   :  { %v1068_v40 = vadd.f32 0.5, %v1067_v30  ;;  %v1207_v30 = vadd.f32 %v1206_v50, %v1200_v60 }
 0x466   :  { %v1072_v34 = vadd.f32 0.5, %v1071_v33  ;;  %v1046_v39 = vpop.f32.mrf.mxu2  ;;  %v1059_v46 = vpop.f32.mrf.mxu3  ;;  %1257 = vmatpush.msra.mxu0 %v1234_v41 }
 0x467   :  { %v1652_v48 = vpop.eup %1651  ;;  %v1212_v33 = vadd.f32 %v1583_v21, %v1207_v30  ;;  %v1097_v39 = vmul.f32 %v1093_v63, %v2561_v3  ;;  %v1111_v46 = vadd.f32 %v1107_v15, %v1099_v12  ;;  %v1292_v12 = vld [vmem:[%s2471_s9] sm:$0xff] }
 0x468   :  { %v1078_v26 = vmul.f32 %v1072_v34, %v2312_v54  ;;  %v1079_v43 = vmul.f32 %v1652_v48, %v1068_v40  ;;  %v1230_v54 = vld [vmem:[%s2468_s6 + $0x70] sm:$0xff]  ;;  %v1233_v40 = vld [vmem:[%s2469_s7 + $0x8] sm:$0xff]  ;;  %v1112_v48 = vadd.f32 %v1108_v20, %v1100_v14  ;;  %v1327_v14 = vld [vmem:[%s2473_s11] sm:$0xff] }
 0x469   :  { %v1654_v51 = vpop.eup %1653  ;;  %1265 = vmatpush.msra.mxu1 %v1230_v54  ;;  %v1218_v34 = vld [vmem:[%s2468_s6 + $0x10] sm:$0xff]  ;;  %1258 = vmatpush.msra.mxu0 %v1233_v40  ;;  %vm1213_vm0 = vcmp.gt.f32.partialorder %v1212_v33, 0.0  ;;  %v1584_v21 = vld [vmem:[%s2470_s8] ss:$0 sm:$0xff] }
 0x46a   :  { %v2337_v55 = vadd.f32 %v1079_v43, %v1078_v26  ;;  %v1076_v27 = vmul.f32 0.5, %v1654_v51  ;;  %v1214_v26 = vmul.f32 0.01, %v1212_v33  ;;  %v1098_v43 = vmul.f32 %v1093_v63, %v2562_v13 }
 0x46b   :  { %1266 = vmatpush.msra.mxu1 %v1229_v57  ;;  %v1089_v51 = vmul.f32 %v1085_v44, %v2552_v29  ;;  %v1216_v29 = vld [vmem:[%s2468_s6] sm:$0xff]  ;;  %v1116_v13 = vadd.f32 %v1112_v48, %v2017_v22  ;;  %v1295_v57 = vld [vmem:[%s2471_s9 + $0x18] sm:$0xff] }
 0x46c   :  { %1655 = vtanh.f32 %v2337_v55  ;;  %v1077_v42 = vadd.f32 0.5, %v1076_v27  ;;  %v1090_v27 = vmul.f32 %v1085_v44, %v2553_v35  ;;  %v1215_v3 = vsel %vm1213_vm0, %v1212_v33, %v1214_v26  ;;  %1316 = vmatpush.msra.mxu2 %v1295_v57 }
 0x46d   :  { %1267 = vmatpush.msra.mxu1 %v1228_v18  ;;  %v1115_v35 = vadd.f32 %v1111_v46, %v2013_v17  ;;  %v1101_v7 = vadd.f32 %v1097_v39, %v1089_v51  ;;  %v1294_v18 = vld [vmem:[%s2471_s9 + $0x10] sm:$0xff]  ;;  %v1585_v39 = vld [vmem:[%s2472_s10] ss:$0 sm:$0xff] }
 0x46e   :  { %v1102_v54 = vadd.f32 %v1098_v43, %v1090_v27  ;;  %1317 = vmatpush.msra.mxu2 %v1294_v18  ;;  %v1586_v51 = vld [vmem:[#allocation2] ss:$0 sm:$0xff] }
 0x46f   :  { %1268 = vmatpush.msra.mxu1 %v1227_v9 }
 0x471   :  { %1269 = vmatpush.msra.mxu1 %v1226_v56 }
 0x472   :  { %v1656_v5 = vpop.eup %1655 }
 0x473   :  { %v1082_v8 = vmul.f32 %v1656_v5, %v1077_v42  ;;  %1270 = vmatpush.msra.mxu1 %v1225_v2  ;;  %v1232_v42 = vld [vmem:[%s2469_s7] sm:$0xff]  ;;  %v1217_v5 = vld [vmem:[%s2468_s6 + $0x8] sm:$0xff] }
 0x474   :  { %1259 = vmatpush.msra.mxu0 %v1232_v42 }
 0x475   :  { %v1119_v45 = vpack.c.bf16 %v1082_v8, %v1082_v8  ;;  %1271 = vmatpush.msra.mxu1 %v1224_v52  ;;  %v1109_v8 = vmul.f32 %v1105_v24, %v2526_v0 }
 0x477   :  { %1128 = vmatmul.bf16.vlgmr.msrb.gmra.mxu0 %v1119_v45  ;;  %1141 = vmatmul.bf16.vlgmr.msrb.gmra.mxu1 %v1119_v45  ;;  %v1113_v63 = vadd.f32 %v1109_v8, %v1101_v7 }
 0x478   :  { %1154 = vmatmul.bf16.vlgmr.msrb.gmra.mxu2 %v1119_v45  ;;  %1167 = vmatmul.bf16.vlgmr.msrb.gmra.mxu3 %v1119_v45  ;;  %v1110_v45 = vmul.f32 %v1105_v24, %v2011_v16 }
 0x479   :  { %1272 = vmatpush.msra.mxu1 %v1223_v53  ;;  %v1117_v2 = vadd.f32 %v1113_v63, %v2024_v59 }
 0x47a   :  { %v1114_v0 = vadd.f32 %v1110_v45, %v1102_v54 }
 0x47b   :  { %1273 = vmatpush.msra.mxu1 %v1222_v6 }
 0x47c   :  { %v1118_v25 = vadd.f32 %v1114_v0, %v2026_v4 }
 0x47d   :  { %1274 = vmatpush.msra.mxu1 %v1221_v47 }
 0x47f   :  { %1275 = vmatpush.msra.mxu1 %v1220_v62  ;;  %v1293_v62 = vld [vmem:[%s2471_s9 + $0x8] sm:$0xff] }
 0x480   :  { %1318 = vmatpush.msra.mxu2 %v1293_v62 }
 0x481   :  { %1276 = vmatpush.msra.mxu1 %v1219_v49 }
 0x482   :  { %1319 = vmatpush.msra.mxu2 %v1292_v12 }
 0x483   :  { %1277 = vmatpush.msra.mxu1 %v1218_v34 }
 0x485   :  { %1278 = vmatpush.msra.mxu1 %v1217_v5 }
 0x487   :  { %1492 = vmatmul.msk.f32.vlgmr.msra.gmra.mxu0 %vm1240_vm1, %v1215_v3  ;;  %1279 = vmatpush.msra.mxu1 %v1216_v29 }
 0x4f4   :  { %v1129_v9 = vpop.f32.mrf.mxu0  ;;  %v1142_v17 = vpop.f32.mrf.mxu1 }
 0x4f5   :  { %v1172_v56 = vadd.f32 %v1129_v9, %v1115_v35  ;;  %v1173_v22 = vadd.f32 %v1142_v17, %v1116_v13 }
 0x4f7   :  { %v1176_v44 = vmul.f32 0.5, %v1172_v56  ;;  %v1180_v16 = vmul.f32 0.5, %v1173_v22 }
 0x4f9   :  { %1657 = vtanh.f32 %v1176_v44 }
 0x4fa   :  { %1659 = vtanh.f32 %v1180_v16 }
 0x4fb   :  { %v1155_v52 = vpop.f32.mrf.mxu2  ;;  %v1168_v1 = vpop.f32.mrf.mxu3 }
 0x4fc   :  { %v1174_v53 = vadd.f32 %v1155_v52, %v1117_v2  ;;  %v1175_v31 = vadd.f32 %v1168_v1, %v1118_v25  ;;  %v1131_v23 = vpop.f32.mrf.mxu0  ;;  %v1144_v38 = vpop.f32.mrf.mxu1 }
 0x4fe   :  { %1661 = vtanh.f32 %v1174_v53  ;;  %v1185_v6 = vmul.f32 0.5, %v1175_v31 }
 0x4ff   :  { %v1658_v10 = vpop.eup %1657 }
 0x500   :  { %v1660_v11 = vpop.eup %1659  ;;  %v1178_v19 = vmul.f32 0.5, %v1658_v10  ;;  %1663 = vtanh.f32 %v1185_v6 }
 0x501   :  { %v1182_v24 = vmul.f32 0.5, %v1660_v11 }
 0x502   :  { %v1179_v58 = vadd.f32 0.5, %v1178_v19 }
 0x503   :  { %v1183_v28 = vadd.f32 0.5, %v1182_v24  ;;  %v1157_v32 = vpop.f32.mrf.mxu2  ;;  %v1170_v36 = vpop.f32.mrf.mxu3 }
 0x504   :  { %v1662_v59 = vpop.eup %1661  ;;  %v1261_v30 = vpop.f32.mrf.mxu0 }
 0x505   :  { %v1189_v4 = vmul.f32 %v1183_v28, %v2337_v55  ;;  %v1190_v37 = vmul.f32 %v1662_v59, %v1179_v58  ;;  %v1328_v55 = vld [vmem:[%s2473_s11 + $0x8] sm:$0xff] }
 0x506   :  { %v1664_v47 = vpop.eup %1663  ;;  %1351 = vmatpush.msra.mxu3 %v1328_v55 }
 0x507   :  { %v1191_v50 = vadd.f32 %v1190_v37, %v1189_v4  ;;  %v1187_v60 = vmul.f32 0.5, %v1664_v47 }
 0x508   :  { %1352 = vmatpush.msra.mxu3 %v1327_v14 }
 0x509   :  { %1665 = vtanh.f32 %v1191_v50  ;;  %v1188_v15 = vadd.f32 0.5, %v1187_v60 }
 0x50f   :  { %v1666_v20 = vpop.eup %1665 }
 0x510   :  { %v1193_v61 = vmul.f32 %v1666_v20, %v1188_v15 }
 0x512   :  { %1280 = vmatmul.f32.vlgmr.msra.gmra.mxu1 %v1193_v61 }
 0x58f   :  { %v1281_v41 = vpop.f32.mrf.mxu1 }
 0x590   :  { %v1282_v49 = vadd.f32 %v1281_v41, %v1261_v30 }
 0x592   :  { %v1288_v33 = vadd.f32 %v1584_v21, %v1282_v49 }
 0x594   :  { %vm1289_vm2 = vcmp.gt.f32.partialorder %v1288_v33, 0.0  ;;  %v1290_v40 = vmul.f32 0.01, %v1288_v33 }
 0x596   :  { %v1291_v34 = vsel %vm1289_vm2, %v1288_v33, %v1290_v40 }
 0x597   :  { %1493 = vmatmul.msk.f32.vlgmr.msra.gmra.mxu2 %vm1300_vm3, %v1291_v34 }
 0x61a   :  { %v1321_v46 = vpop.f32.mrf.mxu2 }
 0x61b   :  { %v1322_v48 = vadd.f32 %v1585_v39, %v1321_v46 }
 0x61d   :  { %vm1324_vm4 = vcmp.gt.f32.partialorder %v1322_v48, 0.0  ;;  %v1325_v26 = vmul.f32 0.01, %v1322_v48 }
 0x61f   :  { %v1326_v43 = vsel %vm1324_vm4, %v1322_v48, %v1325_v26 }
 0x620   :  { %1494 = vmatmul.msk.f32.vlgmr.msra.gmra.mxu3 %vm1333_vm5, %v1326_v43 }
 0x6a3   :  { %v1354_v27 = vpop.f32.mrf.mxu3 }
 0x6a4   :  { %v1355_v42 = vadd.f32 %v1586_v51, %v1354_v27 }
 0x6a6   :  { %1358 = vst.msk [vmem:[%s2475_s13] sm:$0xff] %vm1357_vm6, %v1355_v42 }
 0x6a7   :  { %1363 = vsyncpa [#allocation4], 1 }

</bundles_post_ra>
